<compile_context>
chip_gen: v5e
topology: v5e:2x2
jax: 0.10.0
libtpu: 0.0.40
codegen_flags: <defaults>
</compile_context>

<pallas_src>
import functools

import numpy as np
import jax
import jax.numpy as jnp
from jax import lax
from jax.experimental import pallas as pl
from jax.experimental.pallas import tpu as pltpu


def _round_up(x, m):
    return ((x + m - 1) // m) * m


# ----------------------------------------------------------------------------
# Kernel 1: backbone pointwise conv + bias + ReLU fused with temporal mean
# ----------------------------------------------------------------------------
def _backbone_kernel(x_ref, w_ref, b_ref, o_ref, *, T):
    # x_ref: (1, Cin*T, tile_hw) f32, rows ordered c*T + t (contiguous merge)
    # w_ref: (T, Cout, Cin*T) bf16 -- timestep-t weights live at columns c*T+t,
    #        zeros elsewhere, so each timestep is a canonical MXU matmul.
    # b_ref: (Cout, 1) f32     o_ref: (1, Cout, tile_hw) bf16
    x = x_ref[0].astype(jnp.bfloat16)               # single cast of the block
    b = b_ref[...]                                  # implicit lane broadcast
    acc = jnp.zeros(o_ref.shape[1:], jnp.float32)   # (Cout, tile_hw)
    for t in range(T):                              # static unroll over T
        y = jnp.dot(w_ref[t], x, preferred_element_type=jnp.float32)
        acc = acc + jnp.maximum(y + b, 0.0)         # bias + ReLU per timestep
    o_ref[0] = (acc * (1.0 / T)).astype(jnp.bfloat16)


def _pick_hw_tile(hw_pad, max_tile=2048):
    if hw_pad <= max_tile:
        return hw_pad
    for cand in range(max_tile, 127, -128):
        if hw_pad % cand == 0:
            return cand
    return 128


def backbone_conv_tmean(clips, conv_w, conv_b, *, max_tile=2048):
    """clips [B,Cin,T,H,W] f32 -> channels-first bf16 features [B,Cout,H,W].

    Computes mean_t(ReLU(conv1x1x1(x) + b)) without materializing per-timestep
    activations in HBM, without any XLA transpose of the clip tensor, and with
    bf16 feature writes.
    """
    B, Cin, T, H, W = clips.shape
    Cout = conv_w.shape[0]
    HW = H * W
    hw_pad = _round_up(HW, 128)                     # guarantees a 128-mult tile
    x = clips.reshape(B, Cin * T, HW)               # contiguous merge: free
    if hw_pad != HW:
        x = jnp.pad(x, ((0, 0), (0, 0), (0, hw_pad - HW)))
    tile_hw = _pick_hw_tile(hw_pad, max_tile)

    # per-timestep weights embedded at their (c*T + t) columns (tiny array)
    eye = jnp.eye(T, dtype=jnp.float32)
    w_big = (conv_w[None, :, :, None] * eye[:, None, None, :]
             ).reshape(T, Cout, Cin * T).astype(jnp.bfloat16)

    out = pl.pallas_call(
        functools.partial(_backbone_kernel, T=T),
        out_shape=jax.ShapeDtypeStruct((B, Cout, hw_pad), jnp.bfloat16),
        grid=(B, hw_pad // tile_hw),
        in_specs=[
            pl.BlockSpec((1, Cin * T, tile_hw), lambda bi, m: (bi, 0, m)),
            pl.BlockSpec((T, Cout, Cin * T), lambda bi, m: (0, 0, 0)),
            pl.BlockSpec((Cout, 1), lambda bi, m: (0, 0)),
        ],
        out_specs=pl.BlockSpec((1, Cout, tile_hw), lambda bi, m: (bi, 0, m)),
        compiler_params=pltpu.CompilerParams(
            dimension_semantics=("parallel", "parallel")),
    )(x, w_big, conv_b)
    return out[:, :, :HW].reshape(B, Cout, H, W)


# ----------------------------------------------------------------------------
# Kernel 2: fused ROI masked-mean pooling (single-pass per group) + head FC
# ----------------------------------------------------------------------------
def _head_kernel(gb_ref, boxes_ref, feat_ref, w_ref, b_ref,
                 pooledT_ref, headT_ref, *, img_w, num_classes):
    # gb_ref (SMEM prefetch): per-group batch id (only drives the feature DMA)
    # boxes_ref: (8, R) int32; rows 0..3 = y1, x1, y2, x2 (lane-dense, R=128)
    # feat_ref: (1, C, HW) bf16 channels-first feature map of one batch element
    # w_ref: (KP, C) f32 padded transposed head FC    b_ref: (KP, 1) f32
    # pooledT_ref: (C, R) f32    headT_ref: (KP, R) f32
    del gb_ref
    HW = feat_ref.shape[2]

    # fully vectorized mask build: [HW,1] pixel coords vs [1,R] box bounds
    idx = lax.broadcasted_iota(jnp.int32, (HW, 1), 0)
    py = idx // img_w
    px = idx % img_w
    y1 = boxes_ref[0:1, :]
    x1 = boxes_ref[1:2, :]
    y2 = boxes_ref[2:3, :]
    x2 = boxes_ref[3:4, :]
    inside = (py >= y1) & (py < y2) & (px >= x1) & (px < x2)        # (HW, R)
    maskT = inside.astype(jnp.float32).astype(jnp.bfloat16)         # exact 0/1
    inv_area = 1.0 / jnp.maximum(
        ((y2 - y1) * (x2 - x1)).astype(jnp.float32), 1.0)           # (1, R)

    # masked-mean ROI pooling as one MXU matmul + exact analytic 1/area
    pooledT = jnp.dot(feat_ref[0], maskT,
                      preferred_element_type=jnp.float32) * inv_area  # (C, R)
    pooledT_ref[...] = pooledT

    # fused classifier + evidential FC: (KP, C) @ (C, R) -> lane-dense tile
    raw = (jnp.dot(w_ref[...], pooledT, preferred_element_type=jnp.float32)
           + b_ref[...])                                             # (KP, R)
    # numerically-stable softplus(.) + 1 applied to alpha/beta rows only
    sp1 = jnp.maximum(raw, 0.0) + jnp.log(1.0 + jnp.exp(-jnp.abs(raw))) + 1.0
    row = lax.broadcasted_iota(jnp.int32, raw.shape, 0)
    headT_ref[...] = jnp.where(row < num_classes, raw, sp1)


def head_pool_and_fc(features, boxes_px, w_t_pad, b_pad, *, num_classes,
                     roi_group=128):
    """features [B,C,H,W] bf16; boxes_px [N,5] int32 (batch, y1, x1, y2, x2).

    Returns (pooled [N, C] f32, head [N, 3K] f32); head[:, :K] are raw class
    logits, head[:, K:] already have softplus(.)+1 applied.
    """
    B, C, H, W = features.shape
    KP = w_t_pad.shape[0]
    R = roi_group

    # Host-side: sort + pad boxes per batch so every grid step touches exactly
    # one feature block; consecutive same-batch groups skip the feature DMA.
    bx = np.asarray(boxes_px, dtype=np.int32)
    N = bx.shape[0]
    pos = np.zeros((N,), np.int32)
    rows, group_batch, cursor = [], [], 0
    for b in range(B):
        idxs = np.nonzero(bx[:, 0] == b)[0]
        if idxs.size == 0:
            continue
        n_groups_b = -(-idxs.size // R)
        n_b_pad = n_groups_b * R
        pos[idxs] = cursor + np.arange(idxs.size, dtype=np.int32)
        blk = np.zeros((n_b_pad, 4), np.int32)       # pad rows: zero-area boxes
        blk[:idxs.size] = bx[idxs, 1:5]
        rows.append(blk)
        group_batch.extend([b] * n_groups_b)
        cursor += n_b_pad
    boxes_sorted = np.concatenate(rows, axis=0)
    n_pad = boxes_sorted.shape[0]
    G = len(group_batch)
    box_table = np.zeros((8, n_pad), np.int32)       # long axis last (lane-dense)
    box_table[:4] = boxes_sorted.T

    feats = features.reshape(B, C, H * W)            # free reshape
    # TODO(synk): for very large feature maps on v7x (64 MiB VMEM), add an HW
    # tiling grid axis here and accumulate partial pooled sums per HW tile.
    pooled_t, head_t = pl.pallas_call(
        functools.partial(_head_kernel, img_w=W, num_classes=num_classes),
        out_shape=(jax.ShapeDtypeStruct((C, n_pad), jnp.float32),
                   jax.ShapeDtypeStruct((KP, n_pad), jnp.float32)),
        grid_spec=pltpu.PrefetchScalarGridSpec(
            num_scalar_prefetch=1,
            grid=(G,),
            in_specs=[
                pl.BlockSpec((8, R), lambda g, gb: (0, g)),
                # data-dependent feature block: one batch element per group
                pl.BlockSpec((1, C, H * W), lambda g, gb: (gb[g], 0, 0)),
                pl.BlockSpec((KP, C), lambda g, gb: (0, 0)),
                pl.BlockSpec((KP, 1), lambda g, gb: (0, 0)),
            ],
            out_specs=(
                pl.BlockSpec((C, R), lambda g, gb: (0, g)),
                pl.BlockSpec((KP, R), lambda g, gb: (0, g)),
            ),
        ),
        compiler_params=pltpu.CompilerParams(
            dimension_semantics=("parallel",)),
    )(jnp.asarray(group_batch, dtype=jnp.int32), jnp.asarray(box_table),
      feats, w_t_pad, b_pad)

    pos_j = jnp.asarray(pos)
    pooled = jnp.take(pooled_t.T, pos_j, axis=0)                     # [N, C]
    head = jnp.take(head_t.T, pos_j, axis=0)[:, :3 * num_classes]    # [N, 3K]
    return pooled, head


# ----------------------------------------------------------------------------
# Glue: ROI pixel boxes + model wrapper mirroring AVA_model.forward
# ----------------------------------------------------------------------------
def _rois_to_px(rois, H, W):
    """rois [N,5] f32 (batch, x1, y1, x2, y2) normalized -> int32 pixel boxes."""
    b = rois[:, 0].astype(jnp.int32)
    x1 = jnp.clip(jnp.floor(rois[:, 1] * W).astype(jnp.int32), 0, W - 1)
    y1 = jnp.clip(jnp.floor(rois[:, 2] * H).astype(jnp.int32), 0, H - 1)
    x2 = jnp.clip(jnp.ceil(rois[:, 3] * W).astype(jnp.int32), x1 + 1, W)
    y2 = jnp.clip(jnp.ceil(rois[:, 4] * H).astype(jnp.int32), y1 + 1, H)
    return jnp.stack([b, y1, x1, y2, x2], axis=1)


def _bg_boxes(B, H, W):
    return jnp.stack(
        [jnp.arange(B, dtype=jnp.int32),
         jnp.zeros(B, jnp.int32), jnp.zeros(B, jnp.int32),
         jnp.full((B,), H, jnp.int32), jnp.full((B,), W, jnp.int32)], axis=1)


class AVAModelPallas:
    def __init__(self, cin=8, cfeat=128, num_classes=16, seed=1):
        self.cin, self.cfeat, self.num_classes = cin, cfeat, num_classes
        k = jax.random.split(jax.random.PRNGKey(seed), 4)
        conv_w = 0.1 * jax.random.normal(k[0], (cfeat, cin), jnp.float32)
        cls_w = 0.05 * jax.random.normal(k[1], (cfeat, num_classes), jnp.float32)
        alpha_w = 0.05 * jax.random.normal(k[2], (cfeat, num_classes), jnp.float32)
        beta_w = 0.05 * jax.random.normal(k[3], (cfeat, num_classes), jnp.float32)
        head_w = jnp.concatenate([cls_w, alpha_w, beta_w], axis=1)     # [C, 3K]
        kp = max(128, _round_up(3 * num_classes, 128))                 # lane pad
        head_w_t_pad = jnp.zeros((kp, cfeat), jnp.float32)
        head_w_t_pad = head_w_t_pad.at[:3 * num_classes].set(head_w.T)
        self.params = {
            # conv weight kept in the native torch 1x1x1 layout [Cout, Cin]
            "conv_w": conv_w,
            "conv_b": jnp.zeros((cfeat, 1), jnp.float32),
            # fused head [cls | alpha | beta] and its lane-padded transpose
            "head_w": head_w,
            "head_b": jnp.zeros((1, 3 * num_classes), jnp.float32),
            "head_w_t_pad": head_w_t_pad,                              # [KP, C]
            "head_b_pad": jnp.zeros((kp, 1), jnp.float32),
        }

    # ---------------- backbone ----------------
    def backbone(self, clips):
        # TODO(synk): the real AVA_backbone is a config-driven 3D CNN; stubbed
        # as a pointwise conv + ReLU + temporal mean with matching interfaces.
        feats = backbone_conv_tmean(clips, self.params["conv_w"],
                                    self.params["conv_b"])
        return {"features": feats}                     # [B, C, H, W] bf16

    # ---------------- neck (pure bookkeeping) ----------------
    def neck(self, i_n, data, evaluate=False):
        # TODO(synk): real AVA_neck remaps GT boxes through aug_info (crop /
        # flip / pad); this synthetic neck passes through precomputed boxes.
        return {
            "rois": data["rois"], "num_rois": int(data["rois"].shape[0]),
            "roi_ids": list(range(data["rois"].shape[0])),
            "rois_ps": data["rois_ps"], "num_rois_ps": int(data["rois_ps"].shape[0]),
            "roi_ps_ids": list(range(data["rois_ps"].shape[0])),
            "rois_obj": data["rois_obj"], "num_rois_obj": int(data["rois_obj"].shape[0]),
            "roi_obj_ids": list(range(data["rois_obj"].shape[0])),
            "targets": data["targets"],
            "filenames": i_n["filenames"], "mid_times": i_n["mid_times"],
            "bboxes": data["rois"][:, 1:],
            "sizes_before_padding": [[1.0, 1.0]] * data["targets"].shape[0],
            "person_ids": list(range(data["rois_ps"].shape[0])),
            "bbox_ids": list(range(data["rois"].shape[0])),
            "gt_uncertainties": None,
        }

    # ---------------- head ----------------
    def head(self, i_h):
        feats = i_h["features"]                        # [B, C, H, W] bf16
        B, _, H, W = feats.shape
        K = self.num_classes
        roi_px = _rois_to_px(i_h["rois"], H, W)
        ps_px = _rois_to_px(i_h["rois_ps"], H, W)
        obj_px = _rois_to_px(i_h["rois_obj"], H, W)
        bg_px = _bg_boxes(B, H, W)
        n_roi, n_ps, n_obj = roi_px.shape[0], ps_px.shape[0], obj_px.shape[0]
        all_px = jnp.concatenate([roi_px, ps_px, obj_px, bg_px], axis=0)
        pooled, head_raw = head_pool_and_fc(
            feats, all_px, self.params["head_w_t_pad"], self.params["head_b_pad"],
            num_classes=K)
        ps_feats = pooled[n_roi:n_roi + n_ps]
        obj_feats = pooled[n_roi + n_ps:n_roi + n_ps + n_obj]
        bg_feats = pooled[n_roi + n_ps + n_obj:]
        outputs = head_raw[:n_roi, :K]
        B_alpha = head_raw[:n_roi, K:2 * K]
        B_beta = head_raw[:n_roi, 2 * K:3 * K]
        # TODO(synk): reduce_bg_feats reduction is config dependent; batch mean.
        reduce_bg_feats = jnp.mean(bg_feats, axis=0, keepdims=True)
        return {"outputs": outputs, "bg_feats": bg_feats, "ps_feats": ps_feats,
                "obj_feats": obj_feats, "reduce_bg_feats": reduce_bg_feats,
                "B_alpha": B_alpha, "B_beta": B_beta}

    # ---------------- forward (mirrors AVA_model.forward) ----------------
    def forward(self, data, evaluate=False):
        if not evaluate:
            o_b = self.backbone(data["clips"])
            i_n = {"aug_info": data["aug_info"], "labels": data["labels"],
                   "filenames": data["filenames"], "mid_times": data["mid_times"]}
            o_n = self.neck(i_n, data, evaluate)
            if o_n["num_rois_ps"] == 0:
                return {"outputs": None, "targets": o_n["targets"], "num_rois": 0,
                        "filenames": o_n["filenames"], "mid_times": o_n["mid_times"],
                        "bboxes": o_n["bboxes"], "bg_feats": None, "ps_feats": None,
                        "num_rois_ps": 0, "obj_feats": None, "num_rois_obj": 0,
                        "reduce_bg_feats": None}
            i_h = {"features": o_b["features"], "rois": o_n["rois"],
                   "num_rois": o_n["num_rois"], "roi_ids": o_n["roi_ids"],
                   "sizes_before_padding": o_n["sizes_before_padding"],
                   "person_ids": o_n["person_ids"], "rois_ps": o_n["rois_ps"],
                   "num_rois_ps": o_n["num_rois_ps"], "roi_ps_ids": o_n["roi_ps_ids"],
                   "rois_obj": o_n["rois_obj"], "num_rois_obj": o_n["num_rois_obj"],
                   "roi_obj_ids": o_n["roi_obj_ids"]}
            o_h = self.head(i_h)
            return {"outputs": o_h["outputs"], "targets": o_n["targets"],
                    "num_rois": o_n["num_rois"], "filenames": o_n["filenames"],
                    "mid_times": o_n["mid_times"], "bboxes": o_n["bboxes"],
                    "bg_feats": o_h["bg_feats"], "ps_feats": o_h["ps_feats"],
                    "num_rois_ps": o_n["num_rois_ps"], "obj_feats": o_h["obj_feats"],
                    "num_rois_obj": o_n["num_rois_obj"],
                    "reduce_bg_feats": o_h["reduce_bg_feats"],
                    "B_alpha": o_h["B_alpha"], "B_beta": o_h["B_beta"]}

        # ----- evaluate: stack all aug versions along batch, single backbone
        #       + single head call (amortizes launches, feeds both v7x TCs) ----
        clips_list = data["clips"]
        A = len(clips_list)
        Bq = clips_list[0].shape[0]
        o_b = self.backbone(jnp.concatenate(list(clips_list), axis=0))
        # TODO(synk): real neck remaps boxes per aug via aug_info and de-dups
        # via bbox_ids; the synthetic neck reuses identical ROIs for every aug.
        def _off(r, a):
            return jnp.concatenate([r[:, :1] + float(a * Bq), r[:, 1:]], axis=1)
        rois_all = jnp.concatenate([_off(data["rois"], a) for a in range(A)], 0)
        ps_all = jnp.concatenate([_off(data["rois_ps"], a) for a in range(A)], 0)
        obj_all = jnp.concatenate([_off(data["rois_obj"], a) for a in range(A)], 0)
        o_h = self.head({"features": o_b["features"], "rois": rois_all,
                         "rois_ps": ps_all, "rois_obj": obj_all})
        n_roi = data["rois"].shape[0]
        K = self.num_classes
        return {"outputs": o_h["outputs"].reshape(A, n_roi, K).mean(axis=0),
                "targets": data["targets"], "num_rois": int(n_roi),
                "filenames": data["filenames"], "mid_times": data["mid_times"],
                "bboxes": data["rois"][:, 1:],
                "B_alpha": o_h["B_alpha"].reshape(A, n_roi, K).mean(axis=0),
                "B_beta": o_h["B_beta"].reshape(A, n_roi, K).mean(axis=0),
                "gt_uncertainties": None}


# ----------------------------------------------------------------------------
# Pure-JAX references (for correctness checks)
# ----------------------------------------------------------------------------
def _reference_backbone(clips, conv_w, conv_b):
    y = (jnp.einsum("oc,bcthw->bothw", conv_w, clips)
         + conv_b.reshape(1, -1, 1, 1, 1))
    return jnp.maximum(y, 0.0).mean(axis=2)            # [B, Cout, H, W] f32


def _reference_head(feats_f32, rois, rois_ps, rois_obj, head_w, head_b, K):
    B, C, H, W = feats_f32.shape
    feats_hw = jnp.transpose(feats_f32, (0, 2, 3, 1))  # [B, H, W, C]

    def pool(boxes):
        ys = jnp.arange(H)[None, :, None]
        xs = jnp.arange(W)[None, None, :]
        m = ((ys >= boxes[:, 1][:, None, None]) & (ys < boxes[:, 3][:, None, None]) &
             (xs >= boxes[:, 2][:, None, None]) & (xs < boxes[:, 4][:, None, None]))
        m = m.astype(jnp.float32)
        fb = feats_hw[boxes[:, 0]]
        s = jnp.einsum("nhw,nhwc->nc", m, fb)
        cnt = jnp.maximum(m.sum(axis=(1, 2)), 1.0)
        return s / cnt[:, None]

    roi_f = pool(_rois_to_px(rois, H, W))
    ps_f = pool(_rois_to_px(rois_ps, H, W))
    obj_f = pool(_rois_to_px(rois_obj, H, W))
    bg_f = pool(_bg_boxes(B, H, W))
    raw = jnp.dot(roi_f, head_w, precision=lax.Precision.HIGHEST) + head_b
    return {"outputs": raw[:, :K],
            "B_alpha": jax.nn.softplus(raw[:, K:2 * K]) + 1.0,
            "B_beta": jax.nn.softplus(raw[:, 2 * K:]) + 1.0,
            "ps_feats": ps_f, "obj_feats": obj_f, "bg_feats": bg_f}


# ----------------------------------------------------------------------------
# Main
# ----------------------------------------------------------------------------
if __name__ == "__main__":
    key = jax.random.PRNGKey(0)
    kc, kt = jax.random.split(key, 2)

    B, Cin, T, H, W = 2, 8, 4, 16, 16
    num_classes = 16

    clips = jax.random.normal(kc, (B, Cin, T, H, W), jnp.float32)    # NCTHW
    # normalized ROIs: (batch, x1, y1, x2, y2)
    rois = jnp.array([[0, 0.10, 0.10, 0.60, 0.70],
                      [0, 0.30, 0.20, 0.90, 0.95],
                      [1, 0.05, 0.05, 0.50, 0.50],
                      [1, 0.40, 0.30, 0.95, 0.90]], jnp.float32)
    rois_ps = rois
    rois_obj = jnp.array([[0, 0.20, 0.20, 0.80, 0.80],
                          [1, 0.10, 0.40, 0.60, 0.90],
                          [1, 0.50, 0.10, 0.95, 0.55]], jnp.float32)
    targets = (jax.random.uniform(kt, (rois.shape[0], num_classes)) > 0.7
               ).astype(jnp.float32)

    data = {
        "clips": clips,
        "aug_info": [{"crop_box": [0.0, 0.0, 1.0, 1.0], "flip": False,
                      "pad_ratio": [1.0, 1.0]}] * B,
        "labels": [None] * B,
        "filenames": [f"vid_{i}" for i in range(B)],
        "mid_times": [900 + i for i in range(B)],
        "rois": rois, "rois_ps": rois_ps, "rois_obj": rois_obj,
        "targets": targets,
    }

    model = AVAModelPallas(cin=Cin, cfeat=128, num_classes=num_classes)
    out = model.forward(data, evaluate=False)

    for kk in ["outputs", "B_alpha", "B_beta", "bg_feats", "ps_feats",
               "obj_feats", "reduce_bg_feats"]:
        jax.block_until_ready(out[kk])

    assert out["outputs"].shape == (4, num_classes)
    assert out["B_alpha"].shape == (4, num_classes)
    assert out["B_beta"].shape == (4, num_classes)
    assert out["ps_feats"].shape == (4, 128)
    assert out["obj_feats"].shape == (3, 128)
    assert out["bg_feats"].shape == (B, 128)
    assert out["reduce_bg_feats"].shape == (1, 128)
    assert bool(jnp.all(jnp.isfinite(out["outputs"])))
    assert bool(jnp.all(out["B_alpha"] >= 1.0)) and bool(jnp.all(out["B_beta"] >= 1.0))

    # backbone check vs f32 reference (bf16 feature storage -> loose tol)
    feat_pallas = model.backbone(clips)["features"]
    feat_ref = _reference_backbone(clips, model.params["conv_w"],
                                   model.params["conv_b"])
    assert bool(jnp.allclose(feat_pallas.astype(jnp.float32), feat_ref,
                             rtol=2e-2, atol=2e-2)), "backbone features"

    # head check vs reference pooling/FC on the (bf16 -> f32) backbone features
    ref = _reference_head(feat_pallas.astype(jnp.float32), rois, rois_ps,
                          rois_obj, model.params["head_w"],
                          model.params["head_b"], num_classes)
    for kk in ["outputs", "B_alpha", "B_beta", "ps_feats", "obj_feats", "bg_feats"]:
        assert bool(jnp.allclose(out[kk], ref[kk], rtol=1e-2, atol=1e-2)), kk

    print("KERNEL_OK")
</pallas_src>

<mosaic_0001>
module attributes {stable_mosaic.version = 11 : i64} {
  func.func @_backbone_kernel(%arg0: i32, %arg1: i32, %arg2: memref<1x32x256xf32, #tpu.memory_space<vmem>>, %arg3: memref<4x128x32xbf16, #tpu.memory_space<vmem>>, %arg4: memref<128x1xf32, #tpu.memory_space<vmem>>, %arg5: memref<1x128x256xbf16, #tpu.memory_space<vmem>>) attributes {dimension_semantics = [#tpu.dimension_semantics<parallel>, #tpu.dimension_semantics<parallel>], iteration_bounds = array<i64: 2, 1>, scalar_prefetch = 0 : i64, scratch_operands = 0 : i64, tpu.core_type = #tpu.core_type<tc>, window_params = [{transform_indices = @transform_0, window_bounds = array<i64: 1, 32, 256>}, {pipeline_mode = #tpu.pipeline_mode<synchronous>, transform_indices = @transform_1, window_bounds = array<i64: 4, 128, 32>}, {pipeline_mode = #tpu.pipeline_mode<synchronous>, transform_indices = @transform_2, window_bounds = array<i64: 128, 1>}, {transform_indices = @transform_3, window_bounds = array<i64: 1, 128, 256>}]} {
    %c0 = arith.constant 0 : index
    %c0_0 = arith.constant 0 : index
    %c0_1 = arith.constant 0 : index
    %0 = vector.load %arg2[%c0, %c0_0, %c0_1] : memref<1x32x256xf32, #tpu.memory_space<vmem>>, vector<1x32x256xf32>
    %1 = vector.shape_cast %0 : vector<1x32x256xf32> to vector<32x256xf32>
    %2 = arith.truncf %1 : vector<32x256xf32> to vector<32x256xbf16>
    %c0_2 = arith.constant 0 : index
    %c0_3 = arith.constant 0 : index
    %3 = vector.load %arg4[%c0_2, %c0_3] : memref<128x1xf32, #tpu.memory_space<vmem>>, vector<128x1xf32>
    %cst = arith.constant 0.000000e+00 : f32
    %4 = vector.broadcast %cst : f32 to vector<128x256xf32>
    %c0_4 = arith.constant 0 : index
    %c0_5 = arith.constant 0 : index
    %c0_6 = arith.constant 0 : index
    %5 = vector.load %arg3[%c0_4, %c0_5, %c0_6] : memref<4x128x32xbf16, #tpu.memory_space<vmem>>, vector<1x128x32xbf16>
    %6 = vector.shape_cast %5 : vector<1x128x32xbf16> to vector<128x32xbf16>
    %cst_7 = arith.constant dense<0.000000e+00> : vector<128x256xf32>
    %7 = tpu.matmul %6, %2, %cst_7 {dimension_numbers = #tpu.dot_dimension_numbers<[1], [0], [0], [1], [0, 0, 1, 1], [], []>} : vector<128x32xbf16>, vector<32x256xbf16>, vector<128x256xf32> -> vector<128x256xf32>
    %8 = vector.broadcast %3 : vector<128x1xf32> to vector<128x256xf32>
    %9 = arith.addf %7, %8 : vector<128x256xf32>
    %cst_8 = arith.constant 0.000000e+00 : f32
    %10 = vector.broadcast %cst_8 : f32 to vector<128x256xf32>
    %11 = arith.maximumf %9, %10 : vector<128x256xf32>
    %12 = arith.addf %4, %11 : vector<128x256xf32>
    %c1 = arith.constant 1 : index
    %c0_9 = arith.constant 0 : index
    %c0_10 = arith.constant 0 : index
    %13 = vector.load %arg3[%c1, %c0_9, %c0_10] : memref<4x128x32xbf16, #tpu.memory_space<vmem>>, vector<1x128x32xbf16>
    %14 = vector.shape_cast %13 : vector<1x128x32xbf16> to vector<128x32xbf16>
    %cst_11 = arith.constant dense<0.000000e+00> : vector<128x256xf32>
    %15 = tpu.matmul %14, %2, %cst_11 {dimension_numbers = #tpu.dot_dimension_numbers<[1], [0], [0], [1], [0, 0, 1, 1], [], []>} : vector<128x32xbf16>, vector<32x256xbf16>, vector<128x256xf32> -> vector<128x256xf32>
    %16 = vector.broadcast %3 : vector<128x1xf32> to vector<128x256xf32>
    %17 = arith.addf %15, %16 : vector<128x256xf32>
    %cst_12 = arith.constant 0.000000e+00 : f32
    %18 = vector.broadcast %cst_12 : f32 to vector<128x256xf32>
    %19 = arith.maximumf %17, %18 : vector<128x256xf32>
    %20 = arith.addf %12, %19 : vector<128x256xf32>
    %c2 = arith.constant 2 : index
    %c0_13 = arith.constant 0 : index
    %c0_14 = arith.constant 0 : index
    %21 = vector.load %arg3[%c2, %c0_13, %c0_14] : memref<4x128x32xbf16, #tpu.memory_space<vmem>>, vector<1x128x32xbf16>
    %22 = vector.shape_cast %21 : vector<1x128x32xbf16> to vector<128x32xbf16>
    %cst_15 = arith.constant dense<0.000000e+00> : vector<128x256xf32>
    %23 = tpu.matmul %22, %2, %cst_15 {dimension_numbers = #tpu.dot_dimension_numbers<[1], [0], [0], [1], [0, 0, 1, 1], [], []>} : vector<128x32xbf16>, vector<32x256xbf16>, vector<128x256xf32> -> vector<128x256xf32>
    %24 = vector.broadcast %3 : vector<128x1xf32> to vector<128x256xf32>
    %25 = arith.addf %23, %24 : vector<128x256xf32>
    %cst_16 = arith.constant 0.000000e+00 : f32
    %26 = vector.broadcast %cst_16 : f32 to vector<128x256xf32>
    %27 = arith.maximumf %25, %26 : vector<128x256xf32>
    %28 = arith.addf %20, %27 : vector<128x256xf32>
    %c3 = arith.constant 3 : index
    %c0_17 = arith.constant 0 : index
    %c0_18 = arith.constant 0 : index
    %29 = vector.load %arg3[%c3, %c0_17, %c0_18] : memref<4x128x32xbf16, #tpu.memory_space<vmem>>, vector<1x128x32xbf16>
    %30 = vector.shape_cast %29 : vector<1x128x32xbf16> to vector<128x32xbf16>
    %cst_19 = arith.constant dense<0.000000e+00> : vector<128x256xf32>
    %31 = tpu.matmul %30, %2, %cst_19 {dimension_numbers = #tpu.dot_dimension_numbers<[1], [0], [0], [1], [0, 0, 1, 1], [], []>} : vector<128x32xbf16>, vector<32x256xbf16>, vector<128x256xf32> -> vector<128x256xf32>
    %32 = vector.broadcast %3 : vector<128x1xf32> to vector<128x256xf32>
    %33 = arith.addf %31, %32 : vector<128x256xf32>
    %cst_20 = arith.constant 0.000000e+00 : f32
    %34 = vector.broadcast %cst_20 : f32 to vector<128x256xf32>
    %35 = arith.maximumf %33, %34 : vector<128x256xf32>
    %36 = arith.addf %28, %35 : vector<128x256xf32>
    %cst_21 = arith.constant 2.500000e-01 : f32
    %37 = vector.broadcast %cst_21 : f32 to vector<128x256xf32>
    %38 = arith.mulf %36, %37 : vector<128x256xf32>
    %39 = arith.truncf %38 : vector<128x256xf32> to vector<128x256xbf16>
    %c0_22 = arith.constant 0 : index
    %c0_23 = arith.constant 0 : index
    %c0_24 = arith.constant 0 : index
    %40 = vector.load %arg5[%c0_22, %c0_23, %c0_24] : memref<1x128x256xbf16, #tpu.memory_space<vmem>>, vector<1x128x256xbf16>
    %41 = vector.shape_cast %40 : vector<1x128x256xbf16> to vector<128x256xbf16>
    %42 = vector.shape_cast %39 : vector<128x256xbf16> to vector<1x128x256xbf16>
    tpu.vector_store %arg5[%c0_22, %c0_23, %c0_24], %42 {strides = array<i32>} : memref<1x128x256xbf16, #tpu.memory_space<vmem>>, vector<1x128x256xbf16>,
    return
  }
  func.func @transform_0(%arg0: i32, %arg1: i32) -> (i32, i32, i32) {
    %c0_i32 = arith.constant 0 : i32
    %c0_i32_0 = arith.constant 0 : i32
    return %arg0, %c0_i32, %arg1 : i32, i32, i32
  }
  func.func @transform_1(%arg0: i32, %arg1: i32) -> (i32, i32, i32) {
    %c0_i32 = arith.constant 0 : i32
    %c0_i32_0 = arith.constant 0 : i32
    %c0_i32_1 = arith.constant 0 : i32
    %c0_i32_2 = arith.constant 0 : i32
    return %c0_i32, %c0_i32_0, %c0_i32_1 : i32, i32, i32
  }
  func.func @transform_2(%arg0: i32, %arg1: i32) -> (i32, i32) {
    %c0_i32 = arith.constant 0 : i32
    %c0_i32_0 = arith.constant 0 : i32
    %c0_i32_1 = arith.constant 0 : i32
    return %c0_i32, %c0_i32_0 : i32, i32
  }
  func.func @transform_3(%arg0: i32, %arg1: i32) -> (i32, i32, i32) {
    %c0_i32 = arith.constant 0 : i32
    %c0_i32_0 = arith.constant 0 : i32
    return %arg0, %c0_i32, %arg1 : i32, i32, i32
  }
}

</mosaic_0001>

<bundles_post_ra>
// kernel: tpu_custom_call.1
= control target key start
LH: loop header
LB: loop body
LE: loop exit
PB: predicated region body
PF: predicated region fallthrough
CT: control target
= control target key end

     0   :  { %8 = vsyncpa [#allocation3], 0  ;;  %s2477_s0 = inlined_call_operand.vmem [shape: f32[2,32,256], index: 0, kind: input, shape index: {}]   ;;  %s2478_s1 = inlined_call_operand.vmem [shape: bf16[4,128,32], index: 1, kind: input, shape index: {}]   ;;  %s2479_s2 = inlined_call_operand.vmem [shape: f32[128,1], index: 2, kind: input, shape index: {}]   ;;  %s2480_s3 = inlined_call_operand.hbm [shape: bf16[2,128,256], index: 3, kind: output, shape index: {}]  }
   0x1   :  { %10 = vsyncpa [#allocation3 + $0x1], 0  ;;  %s1893_s12 = smov 0   ;;  %s1895_s13 = smov 0  }
   0x2   :  { %s1897_s14 = smov 0   ;;  %s1899_s15 = smov 0  }
   0x3   :  { %s1901_s16 = smov 0   ;;  %s1903_s17 = smov 0  }
   0x4 LB: > { %s1442_s18 = sadd.s32 4294967295, %s1868_s17   ;;  %s1443_s19 = sadd.s32 4294967294, %s1868_s17   ;;  %s1868_s17 = sphi %s1903_s17, %s16_s17   ;;  %s1864_s16 = sphi %s1901_s16, %s2493_s16   ;;  %s1860_s15 = sphi %s1899_s15, %s2492_s15   ;;  %s1856_s14 = sphi %s1897_s14, %s2491_s14   ;;  %s1852_s13 = sphi %s1895_s13, %s2490_s13   ;;  %s1848_s12 = sphi %s1893_s12, %s2489_s12  }
   0x5   : > { %s28_s20 = sadd.s32 1, %s1864_s16  ;;  %s107_s21 = sadd.s32 1, %s1856_s14 }
   0x6   : > { %p30_p0 = scmp.ge.s32.totalorder %s28_s20, 2  ;;  %p117_p1 = scmp.ne.s32.totalorder %s1856_s14, %s1852_s13 }
   0x7   : > { %p118_p2 = scmp.eq.s32.totalorder %s1442_s18, 1  ;;  %p123_p3 = scmp.ne.s32.totalorder %s1852_s13, %s1848_s12 }
   0x8   : > { %s2495_s20 = smov (%p30_p0, %s28_s20), 0  ;;  %p124_p5 = scmp.eq.s32.totalorder %s1443_s19, 1 }
   0x9   : > { %p1933_p4 = por %p118_p2, %p117_p1  ;;  %s102_s23 = ssub.s32 %s1864_s16, %s2495_s20 }
   0xa   : > { %p1446_p6 = scmp.ge.s32.totalorder %s1868_s17, 1  ;;  %p105_p7 = scmp.eq.s32.totalorder %s102_s23, 0 }
   0xb   : > { %p1940_p8 = por %p124_p5, %p123_p3  ;;  %p161_p9 = scmp.lt.s32.totalorder %s1868_s17, 3 }
   0xc   : > { %s1946_s25 = scalar_select %p105_p7, %s1856_s14, %s107_s21  }
   0xd   : > { %p162_p10 = pnand %p1446_p6, %p161_p9 }
   0xf   : > { %165 = sbr.rel (%p162_p10) target bundleno = 433 (0x1b1), region = 32 }
  0x14   : > { %p190_p11 = scmp.lt.s32.totalorder %s1860_s15, 1  ;;  %v213_v0 = vld [vmem:[%s2479_s2] sm:$0xff]  ;;  %v1870_v1 = vmov 0   ;;  %v215_v2 = vld [vmem:[%s2479_s2 + $0x10] sm:$0xff]  ;;  %v214_v13 = vld [vmem:[%s2479_s2 + $0x8] sm:$0xff]  ;;  %vm365_vm0 = vcmask 261120  }
  0x15   : > { %1787 = vset.pattern.permute.xlu0 %v1870_v1  ;;  %1788 = vset.pattern.permute.xlu1 %v1870_v1  ;;  %v1696_v16 = vld [vmem:[%s2478_s1] sm:$0xff]  ;;  %v216_v18 = vld [vmem:[%s2479_s2 + $0x18] sm:$0xff]  ;;  %v1697_v19 = vld [vmem:[%s2478_s1 + $0x8] sm:$0xff]  ;;  %s186_s23 = sand.u32 1, %s1852_s13   ;;  %s1810_s11 = scalar_lea.hbm %s2480_s3, 256 }
  0x16   : > { %s191_s28 = scalar_select %p190_p11, %s1860_s15, 1  ;;  %247 = vperm.xlu0 %1787, %v213_v0   ;;  %1789 = vset.pattern.permute.xlu2 %v1870_v1  ;;  %v1704_v17 = vld [vmem:[%s2478_s1 + $0x40] sm:$0xff]  ;;  %v1705_v20 = vld [vmem:[%s2478_s1 + $0x48] sm:$0xff]  ;;  %v219_v21 = vld [vmem:[%s2479_s2 + $0x30] sm:$0xff] }
  0x17   : > { %257 = vperm.xlu1 %1788, %v215_v2   ;;  %v1698_v22 = vld [vmem:[%s2478_s1 + $0x10] sm:$0xff]  ;;  %v217_v24 = vld [vmem:[%s2479_s2 + $0x20] sm:$0xff]  ;;  %v220_v25 = vld [vmem:[%s2479_s2 + $0x38] sm:$0xff]  ;;  %s1447_s26 = sshll.u32 %s186_s23, 7  ;;  %s1346_s6 = scalar_lea.sflag [#allocation3], %s186_s23 }
  0x18   : > { %s1695_s4 = sshll.u32 %s191_s28, 6  ;;  %v1706_v23 = vld [vmem:[%s2478_s1 + $0x50] sm:$0xff]  ;;  %267 = vperm.xlu2 %1789, %v217_v24   ;;  %v218_v26 = vld [vmem:[%s2479_s2 + $0x28] sm:$0xff]  ;;  %v1699_v27 = vld [vmem:[%s2478_s1 + $0x18] sm:$0xff]  ;;  %s2336_s27 = scalar_lea.vmem [#allocation2], %s1447_s26 }
  0x19   : > { %s197_s7 = scalar_lea.vmem %s2477_s0, %s1695_s4  ;;  %v1707_v28 = vld [vmem:[%s2478_s1 + $0x58] sm:$0xff]  ;;  %v222_v29 = vld [vmem:[%s2479_s2 + $0x48] sm:$0xff]  ;;  %v223_v30 = vld [vmem:[%s2479_s2 + $0x50] sm:$0xff]  ;;  %s1728_s28 = sshll.u32 %s1860_s15, 7 }
  0x1a   : > { %v205_v3 = vld [vmem:[%s197_s7 + $0x20] sm:$0xff]  ;;  %v207_v4 = vld [vmem:[%s197_s7 + $0x30] sm:$0xff]  ;;  %v206_v5 = vld [vmem:[%s197_s7 + $0x28] sm:$0xff]  ;;  %s1359_s4 = scalar_lea.hbm %s2480_s3, %s1728_s28  ;;  %s1360_s15 = sshll.u32 %s2336_s27, 4  ;;  %s1361_s15 = int_to_ptr.vmem [resolvable:$true] %s1360_s15 }
  0x1b   : > { %v211_v6 = vpack.c.bf16 %v207_v4, %v205_v3  ;;  %v208_v7 = vld [vmem:[%s197_s7 + $0x38] sm:$0xff]  ;;  %v201_v8 = vld [vmem:[%s197_s7] sm:$0xff]  ;;  %v203_v9 = vld [vmem:[%s197_s7 + $0x10] sm:$0xff]  ;;  %s1362_s5 = sshll.u32 %s1359_s4, 4  ;;  %s1363_s5 = int_to_ptr.hbm [resolvable:$true] %s1362_s5 }
  0x1c   : > { %v212_v10 = vpack.c.bf16 %v208_v7, %v206_v5  ;;  %v202_v11 = vld [vmem:[%s197_s7 + $0x8] sm:$0xff]  ;;  %v204_v12 = vld [vmem:[%s197_s7 + $0x18] sm:$0xff]  ;;  %v209_v14 = vpack.c.bf16 %v203_v9, %v201_v8  ;;  %v1700_v31 = vld [vmem:[%s2478_s1 + $0x20] sm:$0xff]  ;;  %s1804_s7 = sshra.s32 %s1363_s5, 4  ;;  %s1805_s7 = int_to_ptr.hbm [resolvable:$true] %s1804_s7 }
  0x1d   : > { %396 = vmatpush.bf16.msra.mxu0 %v211_v6  ;;  %639 = vmatpush.bf16.msra.mxu2 %v211_v6  ;;  %v210_v15 = vpack.c.bf16 %v204_v12, %v202_v11  ;;  %v1708_v32 = vld [vmem:[%s2478_s1 + $0x60] sm:$0xff]  ;;  %v1701_v35 = vld [vmem:[%s2478_s1 + $0x28] sm:$0xff]  ;;  %v224_v38 = vld [vmem:[%s2479_s2 + $0x58] sm:$0xff]  ;;  %s1806_s8 = scalar_lea.hbm %s1805_s7, 128  ;;  %p1811_p1 = scmp.lt.s32.totalorder %s1805_s7, %s2480_s3 }
  0x1e   : > { %445 = vmatpush.bf16.msra.mxu1 %v212_v10  ;;  %688 = vmatpush.bf16.msra.mxu3 %v212_v10  ;;  %v221_v33 = vld [vmem:[%s2479_s2 + $0x40] sm:$0xff]  ;;  %v1709_v36 = vld [vmem:[%s2478_s1 + $0x68] sm:$0xff]  ;;  %v1702_v39 = vld [vmem:[%s2478_s1 + $0x30] sm:$0xff]  ;;  %p1807_p12 = scmp.ne.s32.totalorder %s1805_s7, %s1806_s8  ;;  %p1812_p2 = scmp.lt.s32.totalorder %s1810_s11, %s1806_s8 }
  0x1f   : > { %252 = vperm.xlu0 %1787, %v214_v13   ;;  %262 = vperm.xlu1 %1788, %v216_v18   ;;  %v225_v34 = vld [vmem:[%s2479_s2 + $0x60] sm:$0xff]  ;;  %v226_v37 = vld [vmem:[%s2479_s2 + $0x68] sm:$0xff]  ;;  %v1710_v40 = vld [vmem:[%s2478_s1 + $0x70] sm:$0xff] }
  0x20   : > { %272 = vperm.xlu2 %1789, %v218_v26   ;;  %v228_v41 = vld [vmem:[%s2479_s2 + $0x78] sm:$0xff]  ;;  %v227_v44 = vld [vmem:[%s2479_s2 + $0x70] sm:$0xff]  ;;  %v1712_v45 = vld [vmem:[%s2478_s1 + $0x80] sm:$0xff]  ;;  %p1808_p13 = pnand %p1807_p12, %p1933_p4  ;;  %p1813_p3 = por %p1812_p2, %p1811_p1 }
  0x21   : > { %397 = vmatpush.bf16.msra.mxu0 %v209_v14  ;;  %640 = vmatpush.bf16.msra.mxu2 %v209_v14  ;;  %v1703_v42 = vld [vmem:[%s2478_s1 + $0x38] sm:$0xff]  ;;  %v1720_v46 = vld [vmem:[%s2478_s1 + $0xc0] sm:$0xff]  ;;  %v1721_v7 = vld [vmem:[%s2478_s1 + $0xc8] sm:$0xff] }
  0x22   : > { %446 = vmatpush.bf16.msra.mxu1 %v210_v15  ;;  %689 = vmatpush.bf16.msra.mxu3 %v210_v15  ;;  %v1711_v43 = vld [vmem:[%s2478_s1 + $0x78] sm:$0xff]  ;;  %p1809_p0 = pneg %p1808_p13 }
  0x24   : > { %1482 = vmatmul.msk.bf16.vlgmr.msra.gmra.mxu0 %vm365_vm0, %v1696_v16  ;;  %1546 = vmatmul.msk.bf16.vlgmr.msra.gmra.mxu2 %vm365_vm0, %v1704_v17  ;;  %p1814_p5 = pnand %p1813_p3, %p1809_p0 }
  0x25   : > { %1125 = vmatpush.bf16.msrb.mxu2 %v211_v6  ;;  %1490 = vmatmul.msk.bf16.vlgmr.msra.gmra.mxu1 %vm365_vm0, %v1696_v16 }
  0x26   : > { %1174 = vmatpush.bf16.msrb.mxu3 %v212_v10  ;;  %882 = vmatpush.bf16.msrb.mxu0 %v211_v6  ;;  %v1713_v6 = vld [vmem:[%s2478_s1 + $0x88] sm:$0xff] }
  0x27   : > { %1554 = vmatmul.msk.bf16.vlgmr.msra.gmra.mxu3 %vm365_vm0, %v1704_v17  ;;  %931 = vmatpush.bf16.msrb.mxu1 %v212_v10 }
  0x28   : > { %277 = vperm.xlu0 %1787, %v219_v21   ;;  %282 = vperm.xlu1 %1788, %v220_v25  }
  0x29   : > { %1126 = vmatpush.bf16.msrb.mxu2 %v209_v14  ;;  %287 = vperm.xlu2 %1789, %v221_v33  }
  0x2a   : > { %1175 = vmatpush.bf16.msrb.mxu3 %v210_v15  ;;  %883 = vmatpush.bf16.msrb.mxu0 %v209_v14 }
  0x2b   : > { %932 = vmatpush.bf16.msrb.mxu1 %v210_v15 }
  0x30   : > { %292 = vperm.xlu0 %1787, %v222_v29   ;;  %297 = vperm.xlu1 %1788, %v223_v30  }
  0x31   : > { %302 = vperm.xlu2 %1789, %v224_v38   ;;  %v1714_v38 = vld [vmem:[%s2478_s1 + $0x90] sm:$0xff] }
  0x34   : > { %1483 = vmatmul.msk.bf16.gmra.mxu0 %vm365_vm0, %v1697_v19  ;;  %1547 = vmatmul.msk.bf16.gmra.mxu2 %vm365_vm0, %v1705_v20 }
  0x35   : > { %1491 = vmatmul.msk.bf16.gmra.mxu1 %vm365_vm0, %v1697_v19 }
  0x37   : > { %1555 = vmatmul.msk.bf16.gmra.mxu3 %vm365_vm0, %v1705_v20 }
  0x38   : > { %307 = vperm.xlu0 %1787, %v225_v34   ;;  %312 = vperm.xlu1 %1788, %v226_v37  }
  0x39   : > { %317 = vperm.xlu2 %1789, %v227_v44  }
  0x40   : > { %322 = vperm.xlu0 %1787, %v228_v41  }
  0x44   : > { %1484 = vmatmul.msk.bf16.gmra.mxu0 %vm365_vm0, %v1698_v22  ;;  %1548 = vmatmul.msk.bf16.gmra.mxu2 %vm365_vm0, %v1706_v23 }
  0x45   : > { %1492 = vmatmul.msk.bf16.gmra.mxu1 %vm365_vm0, %v1698_v22 }
  0x47   : > { %1556 = vmatmul.msk.bf16.gmra.mxu3 %vm365_vm0, %v1706_v23 }
  0x54   : > { %1485 = vmatmul.msk.bf16.gmra.mxu0 %vm365_vm0, %v1699_v27  ;;  %1549 = vmatmul.msk.bf16.gmra.mxu2 %vm365_vm0, %v1707_v28 }
  0x55   : > { %1493 = vmatmul.msk.bf16.gmra.mxu1 %vm365_vm0, %v1699_v27 }
  0x57   : > { %1557 = vmatmul.msk.bf16.gmra.mxu3 %vm365_vm0, %v1707_v28 }
  0x64   : > { %1486 = vmatmul.msk.bf16.gmra.mxu0 %vm365_vm0, %v1700_v31  ;;  %1550 = vmatmul.msk.bf16.gmra.mxu2 %vm365_vm0, %v1708_v32 }
  0x65   : > { %1494 = vmatmul.msk.bf16.gmra.mxu1 %vm365_vm0, %v1700_v31 }
  0x67   : > { %1558 = vmatmul.msk.bf16.gmra.mxu3 %vm365_vm0, %v1708_v32 }
  0x72   : > { %v2143_v41 = vpop.permute.xlu2 %267 }
  0x74   : > { %1487 = vmatmul.msk.bf16.gmra.mxu0 %vm365_vm0, %v1701_v35  ;;  %1551 = vmatmul.msk.bf16.gmra.mxu2 %vm365_vm0, %v1709_v36 }
  0x75   : > { %1495 = vmatmul.msk.bf16.gmra.mxu1 %vm365_vm0, %v1701_v35 }
  0x77   : > { %1559 = vmatmul.msk.bf16.gmra.mxu3 %vm365_vm0, %v1709_v36 }
  0x84   : > { %1488 = vmatmul.msk.bf16.gmra.mxu0 %vm365_vm0, %v1702_v39  ;;  %1552 = vmatmul.msk.bf16.gmra.mxu2 %vm365_vm0, %v1710_v40 }
  0x85   : > { %1496 = vmatmul.msk.bf16.gmra.mxu1 %vm365_vm0, %v1702_v39  ;;  %v1722_v39 = vld [vmem:[%s2478_s1 + $0xd0] sm:$0xff] }
  0x87   : > { %1560 = vmatmul.msk.bf16.gmra.mxu3 %vm365_vm0, %v1710_v40 }
  0x88   : > { %v2087_v47 = vpop.permute.xlu0 %247 }
  0x89   : > { %v2113_v9 = vpop.permute.xlu1 %257 }
  0x91   : > { %v2097_v62 = vpop.permute.xlu0 %252  ;;  %v2127_v30 = vpop.permute.xlu1 %262 }
  0x94   : > { %1489 = vmatmul.msk.bf16.gmra.mxu0 %vm365_vm0, %v1703_v42  ;;  %1553 = vmatmul.msk.bf16.gmra.mxu2 %vm365_vm0, %v1711_v43 }
  0x95   : > { %1497 = vmatmul.msk.bf16.gmra.mxu1 %vm365_vm0, %v1703_v42 }
  0x97   : > { %1561 = vmatmul.msk.bf16.gmra.mxu3 %vm365_vm0, %v1711_v43 }
  0xa1   : > { %v399_v48 = vpop.f32.mrf.mxu0 }
  0xa2   : > { %v448_v49 = vpop.f32.mrf.mxu1  ;;  %v400_v50 = vadd.f32 %v399_v48, %v2087_v47 }
  0xa3   : > { %v449_v51 = vadd.f32 %v448_v49, %v2087_v47 }
  0xa4   : > { %1610 = vmatmul.msk.bf16.vlgmr.msrb.gmra.mxu0 %vm365_vm0, %v1712_v45  ;;  %1674 = vmatmul.msk.bf16.vlgmr.msrb.gmra.mxu2 %vm365_vm0, %v1720_v46  ;;  %v488_v57 = vmax.f32 %v400_v50, 0.0 }
  0xa5   : > { %1618 = vmatmul.msk.bf16.vlgmr.msrb.gmra.mxu1 %vm365_vm0, %v1712_v45  ;;  %v489_v60 = vmax.f32 %v449_v51, 0.0 }
  0xa7   : > { %1682 = vmatmul.msk.bf16.vlgmr.msrb.gmra.mxu3 %vm365_vm0, %v1720_v46  ;;  %v642_v52 = vpop.f32.mrf.mxu2 }
  0xa8   : > { %v643_v53 = vadd.f32 %v642_v52, %v2087_v47 }
  0xa9   : > { %v401_v56 = vpop.f32.mrf.mxu0 }
  0xaa   : > { %v691_v54 = vpop.f32.mrf.mxu3  ;;  %v731_v58 = vmax.f32 %v643_v53, 0.0  ;;  %v450_v59 = vpop.f32.mrf.mxu1  ;;  %v402_v1 = vadd.f32 %v401_v56, %v2097_v62 }
  0xab   : > { %v692_v55 = vadd.f32 %v691_v54, %v2087_v47  ;;  %v451_v2 = vadd.f32 %v450_v59, %v2097_v62 }
  0xac   : > { %v2099_v63 = vadd.f32 %v731_v58, %v488_v57  ;;  %v490_v11 = vmax.f32 %v402_v1, 0.0 }
  0xad   : > { %v732_v61 = vmax.f32 %v692_v55, 0.0  ;;  %v491_v14 = vmax.f32 %v451_v2, 0.0  ;;  %v2157_v2 = vpop.permute.xlu2 %272 }
  0xaf   : > { %v2101_v0 = vadd.f32 %v732_v61, %v489_v60  ;;  %v644_v3 = vpop.f32.mrf.mxu2 }
  0xb0   : > { %v645_v4 = vadd.f32 %v644_v3, %v2097_v62 }
  0xb1   : > { %v404_v10 = vpop.f32.mrf.mxu0 }
  0xb2   : > { %v693_v5 = vpop.f32.mrf.mxu3  ;;  %v733_v12 = vmax.f32 %v645_v4, 0.0  ;;  %v453_v13 = vpop.f32.mrf.mxu1  ;;  %v405_v18 = vadd.f32 %v404_v10, %v2113_v9 }
  0xb3   : > { %v694_v8 = vadd.f32 %v693_v5, %v2097_v62  ;;  %v454_v19 = vadd.f32 %v453_v13, %v2113_v9 }
  0xb4   : > { %v2115_v16 = vadd.f32 %v733_v12, %v490_v11  ;;  %1611 = vmatmul.msk.bf16.gmra.mxu0 %vm365_vm0, %v1713_v6  ;;  %1675 = vmatmul.msk.bf16.gmra.mxu2 %vm365_vm0, %v1721_v7  ;;  %v492_v25 = vmax.f32 %v405_v18, 0.0  ;;  %v1715_v11 = vld [vmem:[%s2478_s1 + $0x98] sm:$0xff] }
  0xb5   : > { %v734_v15 = vmax.f32 %v694_v8, 0.0  ;;  %1619 = vmatmul.msk.bf16.gmra.mxu1 %vm365_vm0, %v1713_v6  ;;  %v493_v28 = vmax.f32 %v454_v19, 0.0  ;;  %v1723_v12 = vld [vmem:[%s2478_s1 + $0xd8] sm:$0xff] }
  0xb7   : > { %v2119_v17 = vadd.f32 %v734_v15, %v491_v14  ;;  %1683 = vmatmul.msk.bf16.gmra.mxu3 %vm365_vm0, %v1721_v7  ;;  %v647_v20 = vpop.f32.mrf.mxu2 }
  0xb8   : > { %v648_v21 = vadd.f32 %v647_v20, %v2113_v9 }
  0xb9   : > { %v406_v24 = vpop.f32.mrf.mxu0 }
  0xba   : > { %v696_v22 = vpop.f32.mrf.mxu3  ;;  %v735_v26 = vmax.f32 %v648_v21, 0.0  ;;  %v455_v27 = vpop.f32.mrf.mxu1  ;;  %v407_v33 = vadd.f32 %v406_v24, %v2127_v30 }
  0xbb   : > { %v697_v23 = vadd.f32 %v696_v22, %v2113_v9  ;;  %v456_v34 = vadd.f32 %v455_v27, %v2127_v30  ;;  %v2173_v22 = vpop.permute.xlu0 %277 }
  0xbc   : > { %v2129_v31 = vadd.f32 %v735_v26, %v492_v25  ;;  %v494_v43 = vmax.f32 %v407_v33, 0.0 }
  0xbd   : > { %v736_v29 = vmax.f32 %v697_v23, 0.0  ;;  %v495_v46 = vmax.f32 %v456_v34, 0.0 }
  0xbf   : > { %v2131_v32 = vadd.f32 %v736_v29, %v493_v28  ;;  %v649_v35 = vpop.f32.mrf.mxu2 }
  0xc0   : > { %v650_v36 = vadd.f32 %v649_v35, %v2127_v30 }
  0xc1   : > { %v409_v42 = vpop.f32.mrf.mxu0 }
  0xc2   : > { %v698_v37 = vpop.f32.mrf.mxu3  ;;  %v737_v44 = vmax.f32 %v650_v36, 0.0  ;;  %v458_v45 = vpop.f32.mrf.mxu1  ;;  %v410_v51 = vadd.f32 %v409_v42, %v2143_v41 }
  0xc3   : > { %v699_v40 = vadd.f32 %v698_v37, %v2127_v30  ;;  %v459_v52 = vadd.f32 %v458_v45, %v2143_v41 }
  0xc4   : > { %v2145_v49 = vadd.f32 %v737_v44, %v494_v43  ;;  %1612 = vmatmul.msk.bf16.gmra.mxu0 %vm365_vm0, %v1714_v38  ;;  %1676 = vmatmul.msk.bf16.gmra.mxu2 %vm365_vm0, %v1722_v39  ;;  %v496_v58 = vmax.f32 %v410_v51, 0.0 }
  0xc5   : > { %v738_v48 = vmax.f32 %v699_v40, 0.0  ;;  %1620 = vmatmul.msk.bf16.gmra.mxu1 %vm365_vm0, %v1714_v38  ;;  %v497_v61 = vmax.f32 %v459_v52, 0.0  ;;  %v2187_v40 = vpop.permute.xlu1 %282  ;;  %v1716_v52 = vld [vmem:[%s2478_s1 + $0xa0] sm:$0xff] }
  0xc7   : > { %v2149_v50 = vadd.f32 %v738_v48, %v495_v46  ;;  %1684 = vmatmul.msk.bf16.gmra.mxu3 %vm365_vm0, %v1722_v39  ;;  %v652_v53 = vpop.f32.mrf.mxu2 }
  0xc8   : > { %v653_v54 = vadd.f32 %v652_v53, %v2143_v41  ;;  %v1724_v53 = vld [vmem:[%s2478_s1 + $0xe0] sm:$0xff] }
  0xc9   : > { %v411_v57 = vpop.f32.mrf.mxu0 }
  0xca   : > { %v701_v55 = vpop.f32.mrf.mxu3  ;;  %v739_v59 = vmax.f32 %v653_v54, 0.0  ;;  %v460_v60 = vpop.f32.mrf.mxu1  ;;  %v412_v5 = vadd.f32 %v411_v57, %v2157_v2 }
  0xcb   : > { %v702_v56 = vadd.f32 %v701_v55, %v2143_v41  ;;  %v461_v6 = vadd.f32 %v460_v60, %v2157_v2 }
  0xcc   : > { %v2159_v3 = vadd.f32 %v739_v59, %v496_v58  ;;  %v498_v15 = vmax.f32 %v412_v5, 0.0 }
  0xcd   : > { %v740_v1 = vmax.f32 %v702_v56, 0.0  ;;  %v499_v20 = vmax.f32 %v461_v6, 0.0 }
  0xcf   : > { %v2161_v4 = vadd.f32 %v740_v1, %v497_v61  ;;  %v654_v7 = vpop.f32.mrf.mxu2  ;;  %v2203_v61 = vpop.permute.xlu2 %287 }
  0xd0   : > { %v655_v8 = vadd.f32 %v654_v7, %v2157_v2 }
  0xd1   : > { %v414_v14 = vpop.f32.mrf.mxu0 }
  0xd2   : > { %v703_v10 = vpop.f32.mrf.mxu3  ;;  %v741_v18 = vmax.f32 %v655_v8, 0.0  ;;  %v463_v19 = vpop.f32.mrf.mxu1  ;;  %v415_v25 = vadd.f32 %v414_v14, %v2173_v22 }
  0xd3   : > { %v704_v13 = vadd.f32 %v703_v10, %v2157_v2  ;;  %v464_v27 = vadd.f32 %v463_v19, %v2173_v22 }
  0xd4   : > { %v2175_v23 = vadd.f32 %v741_v18, %v498_v15  ;;  %1613 = vmatmul.msk.bf16.gmra.mxu0 %vm365_vm0, %v1715_v11  ;;  %1677 = vmatmul.msk.bf16.gmra.mxu2 %vm365_vm0, %v1723_v12  ;;  %v500_v35 = vmax.f32 %v415_v25, 0.0 }
  0xd5   : > { %v742_v21 = vmax.f32 %v704_v13, 0.0  ;;  %1621 = vmatmul.msk.bf16.gmra.mxu1 %vm365_vm0, %v1715_v11  ;;  %v501_v38 = vmax.f32 %v464_v27, 0.0 }
  0xd7   : > { %v2179_v24 = vadd.f32 %v742_v21, %v499_v20  ;;  %1685 = vmatmul.msk.bf16.gmra.mxu3 %vm365_vm0, %v1723_v12  ;;  %v657_v26 = vpop.f32.mrf.mxu2  ;;  %v2217_v21 = vpop.permute.xlu0 %292 }
  0xd8   : > { %v658_v28 = vadd.f32 %v657_v26, %v2173_v22 }
  0xd9   : > { %v416_v34 = vpop.f32.mrf.mxu0 }
  0xda   : > { %v706_v29 = vpop.f32.mrf.mxu3  ;;  %v743_v36 = vmax.f32 %v658_v28, 0.0  ;;  %v465_v37 = vpop.f32.mrf.mxu1  ;;  %v417_v44 = vadd.f32 %v416_v34, %v2187_v40 }
  0xdb   : > { %v707_v33 = vadd.f32 %v706_v29, %v2173_v22  ;;  %v466_v45 = vadd.f32 %v465_v37, %v2187_v40 }
  0xdc   : > { %v2189_v42 = vadd.f32 %v743_v36, %v500_v35  ;;  %v502_v56 = vmax.f32 %v417_v44, 0.0  ;;  %v1717_v35 = vld [vmem:[%s2478_s1 + $0xa8] sm:$0xff] }
  0xdd   : > { %v744_v39 = vmax.f32 %v707_v33, 0.0  ;;  %v503_v59 = vmax.f32 %v466_v45, 0.0  ;;  %v1725_v36 = vld [vmem:[%s2478_s1 + $0xe8] sm:$0xff] }
  0xdf   : > { %v2191_v43 = vadd.f32 %v744_v39, %v501_v38  ;;  %v659_v46 = vpop.f32.mrf.mxu2 }
  0xe0   : > { %v660_v48 = vadd.f32 %v659_v46, %v2187_v40 }
  0xe1   : > { %v419_v55 = vpop.f32.mrf.mxu0 }
  0xe2   : > { %v708_v51 = vpop.f32.mrf.mxu3  ;;  %v745_v57 = vmax.f32 %v660_v48, 0.0  ;;  %v468_v58 = vpop.f32.mrf.mxu1  ;;  %v420_v6 = vadd.f32 %v419_v55, %v2203_v61 }
  0xe3   : > { %v709_v54 = vadd.f32 %v708_v51, %v2187_v40  ;;  %v469_v8 = vadd.f32 %v468_v58, %v2203_v61  ;;  %v2233_v51 = vpop.permute.xlu1 %297 }
  0xe4   : > { %v2205_v1 = vadd.f32 %v745_v57, %v502_v56  ;;  %1614 = vmatmul.msk.bf16.gmra.mxu0 %vm365_vm0, %v1716_v52  ;;  %1678 = vmatmul.msk.bf16.gmra.mxu2 %vm365_vm0, %v1724_v53  ;;  %v504_v14 = vmax.f32 %v420_v6, 0.0 }
  0xe5   : > { %v746_v60 = vmax.f32 %v709_v54, 0.0  ;;  %1622 = vmatmul.msk.bf16.gmra.mxu1 %vm365_vm0, %v1716_v52  ;;  %v505_v19 = vmax.f32 %v469_v8, 0.0 }
  0xe7   : > { %v2209_v5 = vadd.f32 %v746_v60, %v503_v59  ;;  %1686 = vmatmul.msk.bf16.gmra.mxu3 %vm365_vm0, %v1724_v53  ;;  %v662_v7 = vpop.f32.mrf.mxu2 }
  0xe8   : > { %v663_v10 = vadd.f32 %v662_v7, %v2203_v61 }
  0xe9   : > { %v421_v13 = vpop.f32.mrf.mxu0 }
  0xea   : > { %v711_v11 = vpop.f32.mrf.mxu3  ;;  %v747_v15 = vmax.f32 %v663_v10, 0.0  ;;  %v470_v18 = vpop.f32.mrf.mxu1  ;;  %v422_v27 = vadd.f32 %v421_v13, %v2217_v21 }
  0xeb   : > { %v712_v12 = vadd.f32 %v711_v11, %v2203_v61  ;;  %v471_v28 = vadd.f32 %v470_v18, %v2217_v21 }
  0xec   : > { %v2219_v25 = vadd.f32 %v747_v15, %v504_v14  ;;  %v506_v39 = vmax.f32 %v422_v27, 0.0 }
  0xed   : > { %v748_v20 = vmax.f32 %v712_v12, 0.0  ;;  %v507_v46 = vmax.f32 %v471_v28, 0.0  ;;  %v2247_v12 = vpop.permute.xlu2 %302  ;;  %v1718_v28 = vld [vmem:[%s2478_s1 + $0xb0] sm:$0xff] }
  0xef   : > { %v2221_v26 = vadd.f32 %v748_v20, %v505_v19  ;;  %v664_v29 = vpop.f32.mrf.mxu2 }
  0xf0   : > { %v665_v33 = vadd.f32 %v664_v29, %v2217_v21  ;;  %v1726_v29 = vld [vmem:[%s2478_s1 + $0xf0] sm:$0xff] }
  0xf1   : > { %v424_v38 = vpop.f32.mrf.mxu0 }
  0xf2   : > { %v713_v34 = vpop.f32.mrf.mxu3  ;;  %v749_v44 = vmax.f32 %v665_v33, 0.0  ;;  %v473_v45 = vpop.f32.mrf.mxu1  ;;  %v425_v54 = vadd.f32 %v424_v38, %v2233_v51 }
  0xf3   : > { %v714_v37 = vadd.f32 %v713_v34, %v2217_v21  ;;  %v474_v56 = vadd.f32 %v473_v45, %v2233_v51 }
  0xf4   : > { %v2235_v52 = vadd.f32 %v749_v44, %v506_v39  ;;  %1615 = vmatmul.msk.bf16.gmra.mxu0 %vm365_vm0, %v1717_v35  ;;  %1679 = vmatmul.msk.bf16.gmra.mxu2 %vm365_vm0, %v1725_v36  ;;  %v508_v6 = vmax.f32 %v425_v54, 0.0  ;;  %v2263_v44 = vpop.permute.xlu0 %307 }
  0xf5   : > { %v750_v48 = vmax.f32 %v714_v37, 0.0  ;;  %1623 = vmatmul.msk.bf16.gmra.mxu1 %vm365_vm0, %v1717_v35  ;;  %v509_v10 = vmax.f32 %v474_v56, 0.0 }
  0xf7   : > { %v2239_v53 = vadd.f32 %v750_v48, %v507_v46  ;;  %1687 = vmatmul.msk.bf16.gmra.mxu3 %vm365_vm0, %v1725_v36  ;;  %v667_v55 = vpop.f32.mrf.mxu2 }
  0xf8   : > { %v668_v57 = vadd.f32 %v667_v55, %v2233_v51 }
  0xf9   : > { %v426_v60 = vpop.f32.mrf.mxu0 }
  0xfa   : > { %v716_v58 = vpop.f32.mrf.mxu3  ;;  %v751_v7 = vmax.f32 %v668_v57, 0.0  ;;  %v475_v8 = vpop.f32.mrf.mxu1  ;;  %v427_v15 = vadd.f32 %v426_v60, %v2247_v12 }
  0xfb   : > { %v717_v59 = vadd.f32 %v716_v58, %v2233_v51  ;;  %v476_v18 = vadd.f32 %v475_v8, %v2247_v12 }
  0xfc   : > { %v2249_v13 = vadd.f32 %v751_v7, %v508_v6  ;;  %v510_v35 = vmax.f32 %v427_v15, 0.0 }
  0xfd   : > { %v752_v11 = vmax.f32 %v717_v59, 0.0  ;;  %v511_v38 = vmax.f32 %v476_v18, 0.0 }
  0xff   : > { %v2251_v14 = vadd.f32 %v752_v11, %v509_v10  ;;  %v669_v19 = vpop.f32.mrf.mxu2  ;;  %v2277_v11 = vpop.permute.xlu1 %312 }
 0x100   : > { %v670_v20 = vadd.f32 %v669_v19, %v2247_v12 }
 0x101   : > { %v429_v34 = vpop.f32.mrf.mxu0 }
 0x102   : > { %v718_v27 = vpop.f32.mrf.mxu3  ;;  %v753_v36 = vmax.f32 %v670_v20, 0.0  ;;  %v478_v37 = vpop.f32.mrf.mxu1  ;;  %v430_v48 = vadd.f32 %v429_v34, %v2263_v44  ;;  %v1727_v34 = vld [vmem:[%s2478_s1 + $0xf8] sm:$0xff] }
 0x103   : > { %v719_v33 = vadd.f32 %v718_v27, %v2247_v12  ;;  %v479_v55 = vadd.f32 %v478_v37, %v2263_v44 }
 0x104   : > { %v2265_v45 = vadd.f32 %v753_v36, %v510_v35  ;;  %1616 = vmatmul.msk.bf16.gmra.mxu0 %vm365_vm0, %v1718_v28  ;;  %1680 = vmatmul.msk.bf16.gmra.mxu2 %vm365_vm0, %v1726_v29  ;;  %v512_v60 = vmax.f32 %v430_v48, 0.0 }
 0x105   : > { %v754_v39 = vmax.f32 %v719_v33, 0.0  ;;  %1624 = vmatmul.msk.bf16.gmra.mxu1 %vm365_vm0, %v1718_v28  ;;  %v513_v8 = vmax.f32 %v479_v55, 0.0  ;;  %v1719_v33 = vld [vmem:[%s2478_s1 + $0xb8] sm:$0xff]  ;;  %v2293_v55 = vpop.permute.xlu2 %317 }
 0x107   : > { %v2269_v46 = vadd.f32 %v754_v39, %v511_v38  ;;  %1688 = vmatmul.msk.bf16.gmra.mxu3 %vm365_vm0, %v1726_v29  ;;  %v672_v54 = vpop.f32.mrf.mxu2 }
 0x108   : > { %v673_v56 = vadd.f32 %v672_v54, %v2263_v44 }
 0x109   : > { %v431_v59 = vpop.f32.mrf.mxu0 }
 0x10a   : > { %v721_v57 = vpop.f32.mrf.mxu3  ;;  %v755_v6 = vmax.f32 %v673_v56, 0.0  ;;  %v480_v7 = vpop.f32.mrf.mxu1  ;;  %v432_v19 = vadd.f32 %v431_v59, %v2277_v11 }
 0x10b   : > { %v722_v58 = vadd.f32 %v721_v57, %v2263_v44  ;;  %v481_v20 = vadd.f32 %v480_v7, %v2277_v11 }
 0x10c   : > { %v2279_v15 = vadd.f32 %v755_v6, %v512_v60  ;;  %v514_v37 = vmax.f32 %v432_v19, 0.0 }
 0x10d   : > { %v756_v10 = vmax.f32 %v722_v58, 0.0  ;;  %v515_v48 = vmax.f32 %v481_v20, 0.0 }
 0x10f   : > { %v2281_v18 = vadd.f32 %v756_v10, %v513_v8  ;;  %v674_v27 = vpop.f32.mrf.mxu2 }
 0x110   : > { %v675_v28 = vadd.f32 %v674_v27, %v2277_v11 }
 0x111   : > { %v434_v36 = vpop.f32.mrf.mxu0 }
 0x112   : > { %v723_v29 = vpop.f32.mrf.mxu3  ;;  %v757_v38 = vmax.f32 %v675_v28, 0.0  ;;  %v483_v39 = vpop.f32.mrf.mxu1  ;;  %v435_v58 = vadd.f32 %v434_v36, %v2293_v55 }
 0x113   : > { %v724_v35 = vadd.f32 %v723_v29, %v2277_v11  ;;  %v484_v60 = vadd.f32 %v483_v39, %v2293_v55 }
 0x114   : > { %v2295_v56 = vadd.f32 %v757_v38, %v514_v37  ;;  %1617 = vmatmul.msk.bf16.gmra.mxu0 %vm365_vm0, %v1719_v33  ;;  %1681 = vmatmul.msk.bf16.gmra.mxu2 %vm365_vm0, %v1727_v34  ;;  %v516_v19 = vmax.f32 %v435_v58, 0.0 }
 0x115   : > { %v758_v54 = vmax.f32 %v724_v35, 0.0  ;;  %1625 = vmatmul.msk.bf16.gmra.mxu1 %vm365_vm0, %v1719_v33  ;;  %v517_v28 = vmax.f32 %v484_v60, 0.0  ;;  %v2307_v35 = vpop.permute.xlu0 %322 }
 0x117   : > { %v2299_v57 = vadd.f32 %v758_v54, %v515_v48  ;;  %1689 = vmatmul.msk.bf16.gmra.mxu3 %vm365_vm0, %v1727_v34  ;;  %v677_v59 = vpop.f32.mrf.mxu2 }
 0x118   : > { %v678_v6 = vadd.f32 %v677_v59, %v2293_v55 }
 0x119   : > { %v436_v10 = vpop.f32.mrf.mxu0 }
 0x11a   : > { %v726_v7 = vpop.f32.mrf.mxu3  ;;  %v759_v20 = vmax.f32 %v678_v6, 0.0  ;;  %v485_v27 = vpop.f32.mrf.mxu1  ;;  %v437_v36 = vadd.f32 %v436_v10, %v2307_v35 }
 0x11b   : > { %v727_v8 = vadd.f32 %v726_v7, %v2293_v55  ;;  %v486_v37 = vadd.f32 %v485_v27, %v2307_v35 }
 0x11c   : > { %v2309_v33 = vadd.f32 %v759_v20, %v516_v19  ;;  %v518_v59 = vmax.f32 %v437_v36, 0.0 }
 0x11d   : > { %v760_v29 = vmax.f32 %v727_v8, 0.0  ;;  %v519_v8 = vmax.f32 %v486_v37, 0.0 }
 0x11f   : > { %v2311_v34 = vadd.f32 %v760_v29, %v517_v28  ;;  %v679_v38 = vpop.f32.mrf.mxu2 }
 0x120   : > { %v680_v39 = vadd.f32 %v679_v38, %v2307_v35 }
 0x121   : > { %2483 = vst [vmem:[#allocation5_spill] sm:$0xff] %v2311_v34  ;;  %v885_v58 = vpop.f32.mrf.mxu0 }
 0x122   : > { %v728_v48 = vpop.f32.mrf.mxu3  ;;  %v761_v60 = vmax.f32 %v680_v39, 0.0  ;;  %v886_v6 = vadd.f32 %v885_v58, %v2087_v47  ;;  %v934_v7 = vpop.f32.mrf.mxu1 }
 0x123   : > { %v729_v54 = vadd.f32 %v728_v48, %v2307_v35  ;;  %v935_v20 = vadd.f32 %v934_v7, %v2087_v47 }
 0x124   : > { %v2319_v10 = vadd.f32 %v761_v60, %v518_v59  ;;  %v974_v28 = vmax.f32 %v886_v6, 0.0 }
 0x125   : > { %v762_v19 = vmax.f32 %v729_v54, 0.0  ;;  %v975_v29 = vmax.f32 %v935_v20, 0.0 }
 0x126   : > { %2484 = vst [vmem:[#allocation6_spill] sm:$0xff] %v2319_v10  ;;  %v1006_v34 = vadd.f32 %v974_v28, %v2099_v63 }
 0x127   : > { %v2321_v27 = vadd.f32 %v762_v19, %v519_v8  ;;  %v1128_v38 = vpop.f32.mrf.mxu2  ;;  %v1007_v60 = vadd.f32 %v975_v29, %v2101_v0 }
 0x128   : > { %v1129_v48 = vadd.f32 %v1128_v38, %v2087_v47 }
 0x129   : > { %2485 = vst [vmem:[#allocation7_spill] sm:$0xff] %v2321_v27  ;;  %v887_v58 = vpop.f32.mrf.mxu0 }
 0x12a   : > { %v1177_v36 = vpop.f32.mrf.mxu3  ;;  %v1217_v37 = vmax.f32 %v1129_v48, 0.0  ;;  %v888_v54 = vadd.f32 %v887_v58, %v2097_v62  ;;  %v936_v59 = vpop.f32.mrf.mxu1 }
 0x12b   : > { %v1178_v39 = vadd.f32 %v1177_v36, %v2087_v47  ;;  %v937_v6 = vadd.f32 %v936_v59, %v2097_v62 }
 0x12c   : > { %v1249_v8 = vadd.f32 %v1217_v37, %v1006_v34  ;;  %v976_v38 = vmax.f32 %v888_v54, 0.0 }
 0x12d   : > { %v1218_v7 = vmax.f32 %v1178_v39, 0.0  ;;  %v977_v36 = vmax.f32 %v937_v6, 0.0 }
 0x12e   : > { %v1281_v20 = vmul.f32 0.25, %v1249_v8  ;;  %v1008_v0 = vadd.f32 %v976_v38, %v2115_v16 }
 0x12f   : > { %v1250_v19 = vadd.f32 %v1218_v7, %v1007_v60  ;;  %v1130_v27 = vpop.f32.mrf.mxu2  ;;  %v1009_v37 = vadd.f32 %v977_v36, %v2119_v17 }
 0x130   : > { %v1131_v63 = vadd.f32 %v1130_v27, %v2097_v62 }
 0x131   : > { %v1282_v47 = vmul.f32 0.25, %v1250_v19  ;;  %v890_v10 = vpop.f32.mrf.mxu0 }
 0x132   : > { %v1179_v28 = vpop.f32.mrf.mxu3  ;;  %v1219_v29 = vmax.f32 %v1131_v63, 0.0  ;;  %v891_v34 = vadd.f32 %v890_v10, %v2113_v9  ;;  %v939_v39 = vpop.f32.mrf.mxu1 }
 0x133   : > { %v1313_v48 = vpack.c.bf16 %v1282_v47, %v1281_v20  ;;  %v1180_v58 = vadd.f32 %v1179_v28, %v2097_v62  ;;  %v940_v27 = vadd.f32 %v939_v39, %v2113_v9 }
 0x134   : > { %v1251_v59 = vadd.f32 %v1219_v29, %v1008_v0  ;;  %v978_v7 = vmax.f32 %v891_v34, 0.0 }
 0x135   : > { %1329 = vst [vmem:[%s2336_s27] sm:$0xff] %v1313_v48  ;;  %v1220_v54 = vmax.f32 %v1180_v58, 0.0  ;;  %v979_v16 = vmax.f32 %v940_v27, 0.0 }
 0x136   : > { %v1283_v62 = vmul.f32 0.25, %v1251_v59  ;;  %v1010_v17 = vadd.f32 %v978_v7, %v2129_v31 }
 0x137   : > { %v1252_v60 = vadd.f32 %v1220_v54, %v1009_v37  ;;  %v1133_v8 = vpop.f32.mrf.mxu2  ;;  %v1011_v48 = vadd.f32 %v979_v16, %v2131_v32 }
 0x138   : > { %v1134_v10 = vadd.f32 %v1133_v8, %v2113_v9 }
 0x139   : > { %v1284_v6 = vmul.f32 0.25, %v1252_v60  ;;  %v892_v47 = vpop.f32.mrf.mxu0 }
 0x13a   : > { %v1182_v19 = vpop.f32.mrf.mxu3  ;;  %v1221_v36 = vmax.f32 %v1134_v10, 0.0  ;;  %v893_v63 = vadd.f32 %v892_v47, %v2127_v30  ;;  %v941_v28 = vpop.f32.mrf.mxu1 }
 0x13b   : > { %v1314_v20 = vpack.c.bf16 %v1284_v6, %v1283_v62  ;;  %v1183_v38 = vadd.f32 %v1182_v19, %v2113_v9  ;;  %v942_v0 = vadd.f32 %v941_v28, %v2127_v30 }
 0x13c   : > { %v1253_v29 = vadd.f32 %v1221_v36, %v1010_v17  ;;  %v980_v37 = vmax.f32 %v893_v63, 0.0 }
 0x13d   : > { %1330 = vst [vmem:[%s2336_s27 + $0x8] sm:$0xff] %v1314_v20  ;;  %v1222_v58 = vmax.f32 %v1183_v38, 0.0  ;;  %v981_v9 = vmax.f32 %v942_v0, 0.0 }
 0x13e   : > { %v1285_v39 = vmul.f32 0.25, %v1253_v29  ;;  %v1012_v32 = vadd.f32 %v980_v37, %v2145_v49 }
 0x13f   : > { %v1254_v34 = vadd.f32 %v1222_v58, %v1011_v48  ;;  %v1135_v27 = vpop.f32.mrf.mxu2  ;;  %v1013_v10 = vadd.f32 %v981_v9, %v2149_v50 }
 0x140   : > { %v1136_v31 = vadd.f32 %v1135_v27, %v2127_v30 }
 0x141   : > { %v1286_v54 = vmul.f32 0.25, %v1254_v34  ;;  %v895_v7 = vpop.f32.mrf.mxu0 }
 0x142   : > { %v1184_v59 = vpop.f32.mrf.mxu3  ;;  %v1223_v6 = vmax.f32 %v1136_v31, 0.0  ;;  %v896_v16 = vadd.f32 %v895_v7, %v2143_v41  ;;  %v944_v8 = vpop.f32.mrf.mxu1 }
 0x143   : > { %v1315_v60 = vpack.c.bf16 %v1286_v54, %v1285_v39  ;;  %v1185_v62 = vadd.f32 %v1184_v59, %v2127_v30  ;;  %v945_v20 = vadd.f32 %v944_v8, %v2143_v41 }
 0x144   : > { %v1255_v38 = vadd.f32 %v1223_v6, %v1012_v32  ;;  %v982_v36 = vmax.f32 %v896_v16, 0.0 }
 0x145   : > { %1331 = vst [vmem:[%s2336_s27 + $0x10] sm:$0xff] %v1315_v60  ;;  %v1224_v19 = vmax.f32 %v1185_v62, 0.0  ;;  %v983_v30 = vmax.f32 %v945_v20, 0.0 }
 0x146   : > { %v1287_v17 = vmul.f32 0.25, %v1255_v38  ;;  %v1014_v50 = vadd.f32 %v982_v36, %v2159_v3 }
 0x147   : > { %v1256_v47 = vadd.f32 %v1224_v19, %v1013_v10  ;;  %v1138_v28 = vpop.f32.mrf.mxu2  ;;  %v1015_v54 = vadd.f32 %v983_v30, %v2161_v4 }
 0x148   : > { %v1139_v49 = vadd.f32 %v1138_v28, %v2143_v41 }
 0x149   : > { %v1288_v63 = vmul.f32 0.25, %v1256_v47  ;;  %v897_v29 = vpop.f32.mrf.mxu0 }
 0x14a   : > { %v1187_v48 = vpop.f32.mrf.mxu3  ;;  %v1225_v34 = vmax.f32 %v1139_v49, 0.0  ;;  %v898_v39 = vadd.f32 %v897_v29, %v2157_v2  ;;  %v946_v37 = vpop.f32.mrf.mxu1 }
 0x14b   : > { %v1316_v58 = vpack.c.bf16 %v1288_v63, %v1287_v17  ;;  %v1188_v0 = vadd.f32 %v1187_v48, %v2143_v41  ;;  %v947_v27 = vadd.f32 %v946_v37, %v2157_v2 }
 0x14c   : > { %v1257_v31 = vadd.f32 %v1225_v34, %v1014_v50  ;;  %v984_v62 = vmax.f32 %v898_v39, 0.0 }
 0x14d   : > { %1332 = vst [vmem:[%s2336_s27 + $0x18] sm:$0xff] %v1316_v58  ;;  %v1226_v9 = vmax.f32 %v1188_v0, 0.0  ;;  %v985_v41 = vmax.f32 %v947_v27, 0.0 }
 0x14e   : > { %v1289_v60 = vmul.f32 0.25, %v1257_v31  ;;  %v1016_v4 = vadd.f32 %v984_v62, %v2175_v23 }
 0x14f   : > { %v1258_v59 = vadd.f32 %v1226_v9, %v1015_v54  ;;  %v1140_v32 = vpop.f32.mrf.mxu2  ;;  %v1017_v47 = vadd.f32 %v985_v41, %v2179_v24 }
 0x150   : > { %v1141_v3 = vadd.f32 %v1140_v32, %v2157_v2 }
 0x151   : > { %v1290_v7 = vmul.f32 0.25, %v1258_v59  ;;  %v900_v10 = vpop.f32.mrf.mxu0 }
 0x152   : > { %v1189_v6 = vpop.f32.mrf.mxu3  ;;  %v1227_v19 = vmax.f32 %v1141_v3, 0.0  ;;  %v901_v20 = vadd.f32 %v900_v10, %v2173_v22  ;;  %v949_v38 = vpop.f32.mrf.mxu1 }
 0x153   : > { %v1317_v16 = vpack.c.bf16 %v1290_v7, %v1289_v60  ;;  %v1190_v8 = vadd.f32 %v1189_v6, %v2157_v2  ;;  %v950_v36 = vadd.f32 %v949_v38, %v2173_v22 }
 0x154   : > { %v1259_v63 = vadd.f32 %v1227_v19, %v1016_v4  ;;  %v986_v49 = vmax.f32 %v901_v20, 0.0 }
 0x155   : > { %1333 = vst [vmem:[%s2336_s27 + $0x20] sm:$0xff] %v1317_v16  ;;  %v1228_v17 = vmax.f32 %v1190_v8, 0.0  ;;  %v987_v2 = vmax.f32 %v950_v36, 0.0 }
 0x156   : > { %v1291_v28 = vmul.f32 0.25, %v1259_v63  ;;  %v1018_v24 = vadd.f32 %v986_v49, %v2189_v42 }
 0x157   : > { %v1260_v30 = vadd.f32 %v1228_v17, %v1017_v47  ;;  %v1143_v58 = vpop.f32.mrf.mxu2  ;;  %v1019_v9 = vadd.f32 %v987_v2, %v2191_v43 }
 0x158   : > { %v1144_v23 = vadd.f32 %v1143_v58, %v2173_v22 }
 0x159   : > { %v1292_v48 = vmul.f32 0.25, %v1260_v30  ;;  %v902_v34 = vpop.f32.mrf.mxu0 }
 0x15a   : > { %v1192_v0 = vpop.f32.mrf.mxu3  ;;  %v1229_v39 = vmax.f32 %v1144_v23, 0.0  ;;  %v903_v37 = vadd.f32 %v902_v34, %v2187_v40  ;;  %v951_v54 = vpop.f32.mrf.mxu1 }
 0x15b   : > { %v1318_v29 = vpack.c.bf16 %v1292_v48, %v1291_v28  ;;  %v1193_v50 = vadd.f32 %v1192_v0, %v2173_v22  ;;  %v952_v31 = vadd.f32 %v951_v54, %v2187_v40 }
 0x15c   : > { %v1261_v59 = vadd.f32 %v1229_v39, %v1018_v24  ;;  %v988_v7 = vmax.f32 %v903_v37, 0.0 }
 0x15d   : > { %1334 = vst [vmem:[%s2336_s27 + $0x28] sm:$0xff] %v1318_v29  ;;  %v1230_v27 = vmax.f32 %v1193_v50, 0.0  ;;  %v989_v22 = vmax.f32 %v952_v31, 0.0 }
 0x15e   : > { %v1293_v62 = vmul.f32 0.25, %v1261_v59  ;;  %v1020_v43 = vadd.f32 %v988_v7, %v2205_v1 }
 0x15f   : > { %v1262_v60 = vadd.f32 %v1230_v27, %v1019_v9  ;;  %v1145_v32 = vpop.f32.mrf.mxu2  ;;  %v1021_v20 = vadd.f32 %v989_v22, %v2209_v5 }
 0x160   : > { %v1146_v42 = vadd.f32 %v1145_v32, %v2187_v40 }
 0x161   : > { %v1294_v41 = vmul.f32 0.25, %v1262_v60  ;;  %v905_v8 = vpop.f32.mrf.mxu0 }
 0x162   : > { %v1194_v3 = vpop.f32.mrf.mxu3  ;;  %v1231_v10 = vmax.f32 %v1146_v42, 0.0  ;;  %v906_v4 = vadd.f32 %v905_v8, %v2203_v61  ;;  %v954_v19 = vpop.f32.mrf.mxu1 }
 0x163   : > { %v1319_v6 = vpack.c.bf16 %v1294_v41, %v1293_v62  ;;  %v1195_v16 = vadd.f32 %v1194_v3, %v2187_v40  ;;  %v955_v47 = vadd.f32 %v954_v19, %v2203_v61 }
 0x164   : > { %v1263_v17 = vadd.f32 %v1231_v10, %v1020_v43  ;;  %v990_v30 = vmax.f32 %v906_v4, 0.0 }
 0x165   : > { %1335 = vst [vmem:[%s2336_s27 + $0x30] sm:$0xff] %v1319_v6  ;;  %v1232_v38 = vmax.f32 %v1195_v16, 0.0  ;;  %v991_v40 = vmax.f32 %v955_v47, 0.0 }
 0x166   : > { %v1295_v63 = vmul.f32 0.25, %v1263_v17  ;;  %v1022_v5 = vadd.f32 %v990_v30, %v2219_v25 }
 0x167   : > { %v1264_v36 = vadd.f32 %v1232_v38, %v1021_v20  ;;  %v1148_v49 = vpop.f32.mrf.mxu2  ;;  %v1023_v34 = vadd.f32 %v991_v40, %v2221_v26 }
 0x168   : > { %v1149_v1 = vadd.f32 %v1148_v49, %v2203_v61 }
 0x169   : > { %v1296_v28 = vmul.f32 0.25, %v1264_v36  ;;  %v907_v23 = vpop.f32.mrf.mxu0 }
 0x16a   : > { %v1197_v48 = vpop.f32.mrf.mxu3  ;;  %v1233_v0 = vmax.f32 %v1149_v1, 0.0  ;;  %v908_v29 = vadd.f32 %v907_v23, %v2217_v21  ;;  %v956_v50 = vpop.f32.mrf.mxu1 }
 0x16b   : > { %v1320_v2 = vpack.c.bf16 %v1296_v28, %v1295_v63  ;;  %v1198_v58 = vadd.f32 %v1197_v48, %v2203_v61  ;;  %v957_v39 = vadd.f32 %v956_v50, %v2217_v21 }
 0x16c   : > { %v1265_v37 = vadd.f32 %v1233_v0, %v1022_v5  ;;  %v992_v27 = vmax.f32 %v908_v29, 0.0 }
 0x16d   : > { %1336 = vst [vmem:[%s2336_s27 + $0x38] sm:$0xff] %v1320_v2  ;;  %v1234_v24 = vmax.f32 %v1198_v58, 0.0  ;;  %v993_v61 = vmax.f32 %v957_v39, 0.0 }
 0x16e   : > { %v1297_v9 = vmul.f32 0.25, %v1265_v37  ;;  %v1024_v26 = vadd.f32 %v992_v27, %v2235_v52 }
 0x16f   : > { %v1266_v54 = vadd.f32 %v1234_v24, %v1023_v34  ;;  %v1150_v59 = vpop.f32.mrf.mxu2  ;;  %v1025_v3 = vadd.f32 %v993_v61, %v2239_v53 }
 0x170   : > { %v1151_v25 = vadd.f32 %v1150_v59, %v2217_v21 }
 0x171   : > { %v1298_v31 = vmul.f32 0.25, %v1266_v54  ;;  %v910_v41 = vpop.f32.mrf.mxu0 }
 0x172   : > { %v1199_v60 = vpop.f32.mrf.mxu3  ;;  %v1235_v22 = vmax.f32 %v1151_v25, 0.0  ;;  %v911_v32 = vadd.f32 %v910_v41, %v2233_v51  ;;  %v959_v42 = vpop.f32.mrf.mxu1 }
 0x173   : > { %v1321_v62 = vpack.c.bf16 %v1298_v31, %v1297_v9  ;;  %v1200_v7 = vadd.f32 %v1199_v60, %v2217_v21  ;;  %v960_v16 = vadd.f32 %v959_v42, %v2233_v51 }
 0x174   : > { %v1267_v8 = vadd.f32 %v1235_v22, %v1024_v26  ;;  %v994_v4 = vmax.f32 %v911_v32, 0.0 }
 0x175   : > { %1337 = vst [vmem:[%s2336_s27 + $0x40] sm:$0xff] %v1321_v62  ;;  %v1236_v6 = vmax.f32 %v1200_v7, 0.0  ;;  %v995_v21 = vmax.f32 %v960_v16, 0.0 }
 0x176   : > { %v1299_v10 = vmul.f32 0.25, %v1267_v8  ;;  %v1026_v53 = vadd.f32 %v994_v4, %v2249_v13 }
 0x177   : > { %v1268_v43 = vadd.f32 %v1236_v6, %v1025_v3  ;;  %v1153_v20 = vpop.f32.mrf.mxu2  ;;  %v1027_v40 = vadd.f32 %v995_v21, %v2251_v14 }
 0x178   : > { %v1154_v52 = vadd.f32 %v1153_v20, %v2233_v51 }
 0x179   : > { %v1300_v19 = vmul.f32 0.25, %v1268_v43  ;;  %v912_v36 = vpop.f32.mrf.mxu0 }
 0x17a   : > { %v1202_v38 = vpop.f32.mrf.mxu3  ;;  %v1237_v63 = vmax.f32 %v1154_v52, 0.0  ;;  %v913_v30 = vadd.f32 %v912_v36, %v2247_v12  ;;  %v961_v28 = vpop.f32.mrf.mxu1 }
 0x17b   : > { %v1322_v47 = vpack.c.bf16 %v1300_v19, %v1299_v10  ;;  %v1203_v17 = vadd.f32 %v1202_v38, %v2233_v51  ;;  %v962_v1 = vadd.f32 %v961_v28, %v2247_v12 }
 0x17c   : > { %v1269_v48 = vadd.f32 %v1237_v63, %v1026_v53  ;;  %v996_v23 = vmax.f32 %v913_v30, 0.0 }
 0x17d   : > { %1338 = vst [vmem:[%s2336_s27 + $0x48] sm:$0xff] %v1322_v47  ;;  %v1238_v49 = vmax.f32 %v1203_v17, 0.0  ;;  %v997_v51 = vmax.f32 %v962_v1, 0.0 }
 0x17e   : > { %v1301_v58 = vmul.f32 0.25, %v1269_v48  ;;  %v1028_v14 = vadd.f32 %v996_v23, %v2265_v45 }
 0x17f   : > { %v1270_v2 = vadd.f32 %v1238_v49, %v1027_v40  ;;  %v1155_v0 = vpop.f32.mrf.mxu2  ;;  %v1029_v9 = vadd.f32 %v997_v51, %v2269_v46 }
 0x180   : > { %v1156_v13 = vadd.f32 %v1155_v0, %v2247_v12 }
 0x181   : > { %v1302_v5 = vmul.f32 0.25, %v1270_v2  ;;  %v915_v24 = vpop.f32.mrf.mxu0 }
 0x182   : > { %v1204_v29 = vpop.f32.mrf.mxu3  ;;  %v1239_v39 = vmax.f32 %v1156_v13, 0.0  ;;  %v916_v37 = vadd.f32 %v915_v24, %v2263_v44  ;;  %v964_v54 = vpop.f32.mrf.mxu1 }
 0x183   : > { %v1323_v50 = vpack.c.bf16 %v1302_v5, %v1301_v58  ;;  %v1205_v34 = vadd.f32 %v1204_v29, %v2247_v12  ;;  %v965_v31 = vadd.f32 %v964_v54, %v2263_v44 }
 0x184   : > { %v1271_v61 = vadd.f32 %v1239_v39, %v1028_v14  ;;  %v998_v60 = vmax.f32 %v916_v37, 0.0  ;;  %v2486_v14 = vld [vmem:[#allocation5_spill] sm:$0xff] }
 0x185   : > { %1339 = vst [vmem:[%s2336_s27 + $0x50] sm:$0xff] %v1323_v50  ;;  %v1240_v27 = vmax.f32 %v1205_v34, 0.0  ;;  %v999_v12 = vmax.f32 %v965_v31, 0.0 }
 0x186   : > { %v1303_v25 = vmul.f32 0.25, %v1271_v61  ;;  %v1030_v46 = vadd.f32 %v998_v60, %v2279_v15 }
 0x187   : > { %v1272_v59 = vadd.f32 %v1240_v27, %v1029_v9  ;;  %v1158_v7 = vpop.f32.mrf.mxu2  ;;  %v1031_v16 = vadd.f32 %v999_v12, %v2281_v18 }
 0x188   : > { %v1159_v45 = vadd.f32 %v1158_v7, %v2263_v44  ;;  %v2487_v7 = vld [vmem:[#allocation6_spill] sm:$0xff] }
 0x189   : > { %v1304_v62 = vmul.f32 0.25, %v1272_v59  ;;  %v917_v32 = vpop.f32.mrf.mxu0 }
 0x18a   : > { %v1207_v41 = vpop.f32.mrf.mxu3  ;;  %v1241_v42 = vmax.f32 %v1159_v45, 0.0  ;;  %v918_v3 = vadd.f32 %v917_v32, %v2277_v11  ;;  %v966_v6 = vpop.f32.mrf.mxu1 }
 0x18b   : > { %v1324_v26 = vpack.c.bf16 %v1304_v62, %v1303_v25  ;;  %v1208_v22 = vadd.f32 %v1207_v41, %v2263_v44  ;;  %v967_v43 = vadd.f32 %v966_v6, %v2277_v11 }
 0x18c   : > { %v1273_v10 = vadd.f32 %v1241_v42, %v1030_v46  ;;  %v1000_v21 = vmax.f32 %v918_v3, 0.0 }
 0x18d   : > { %1340 = vst [vmem:[%s2336_s27 + $0x58] sm:$0xff] %v1324_v26  ;;  %v1242_v8 = vmax.f32 %v1208_v22, 0.0  ;;  %v1001_v44 = vmax.f32 %v967_v43, 0.0  ;;  %v2488_v26 = vld [vmem:[#allocation7_spill] sm:$0xff] }
 0x18e   : > { %v1305_v19 = vmul.f32 0.25, %v1273_v10  ;;  %v1032_v18 = vadd.f32 %v1000_v21, %v2295_v56 }
 0x18f   : > { %v1274_v4 = vadd.f32 %v1242_v8, %v1031_v16  ;;  %v1160_v52 = vpop.f32.mrf.mxu2  ;;  %v1033_v28 = vadd.f32 %v1001_v44, %v2299_v57 }
 0x190   : > { %v1161_v15 = vadd.f32 %v1160_v52, %v2277_v11 }
 0x191   : > { %v1306_v20 = vmul.f32 0.25, %v1274_v4  ;;  %v920_v36 = vpop.f32.mrf.mxu0 }
 0x192   : > { %v1209_v38 = vpop.f32.mrf.mxu3  ;;  %v1243_v53 = vmax.f32 %v1161_v15, 0.0  ;;  %v921_v63 = vadd.f32 %v920_v36, %v2293_v55  ;;  %v969_v30 = vpop.f32.mrf.mxu1 }
 0x193   : > { %v1325_v47 = vpack.c.bf16 %v1306_v20, %v1305_v19  ;;  %v1210_v17 = vadd.f32 %v1209_v38, %v2277_v11  ;;  %v970_v49 = vadd.f32 %v969_v30, %v2293_v55 }
 0x194   : > { %v1275_v1 = vadd.f32 %v1243_v53, %v1032_v18  ;;  %v1002_v58 = vmax.f32 %v921_v63, 0.0 }
 0x195   : > { %1341 = vst [vmem:[%s2336_s27 + $0x60] sm:$0xff] %v1325_v47  ;;  %v1244_v40 = vmax.f32 %v1210_v17, 0.0  ;;  %v1003_v11 = vmax.f32 %v970_v49, 0.0 }
 0x196   : > { %v1307_v2 = vmul.f32 0.25, %v1275_v1  ;;  %v1034_v57 = vadd.f32 %v1002_v58, %v2309_v33 }
 0x197   : > { %v1276_v48 = vadd.f32 %v1244_v40, %v1033_v28  ;;  %v1163_v5 = vpop.f32.mrf.mxu2  ;;  %v1035_v39 = vadd.f32 %v1003_v11, %v2486_v14 }
 0x198   : > { %v1164_v56 = vadd.f32 %v1163_v5, %v2293_v55 }
 0x199   : > { %v1308_v23 = vmul.f32 0.25, %v1276_v48  ;;  %v922_v29 = vpop.f32.mrf.mxu0 }
 0x19a   : > { %v1212_v51 = vpop.f32.mrf.mxu3  ;;  %v1245_v50 = vmax.f32 %v1164_v56, 0.0  ;;  %v923_v34 = vadd.f32 %v922_v29, %v2307_v35  ;;  %v971_v24 = vpop.f32.mrf.mxu1 }
 0x19b   : > { %v1326_v0 = vpack.c.bf16 %v1308_v23, %v1307_v2  ;;  %v1213_v13 = vadd.f32 %v1212_v51, %v2293_v55  ;;  %v972_v54 = vadd.f32 %v971_v24, %v2307_v35 }
 0x19c   : > { %v1277_v9 = vadd.f32 %v1245_v50, %v1034_v57  ;;  %v1004_v61 = vmax.f32 %v923_v34, 0.0 }
 0x19d   : > { %1342 = vst [vmem:[%s2336_s27 + $0x68] sm:$0xff] %v1326_v0  ;;  %v1246_v37 = vmax.f32 %v1213_v13, 0.0  ;;  %v1005_v59 = vmax.f32 %v972_v54, 0.0 }
 0x19e   : > { %v1309_v31 = vmul.f32 0.25, %v1277_v9  ;;  %v1036_v45 = vadd.f32 %v1004_v61, %v2487_v7 }
 0x19f   : > { %v1278_v27 = vadd.f32 %v1246_v37, %v1035_v39  ;;  %v1165_v25 = vpop.f32.mrf.mxu2  ;;  %v1037_v22 = vadd.f32 %v1005_v59, %v2488_v26 }
 0x1a0   : > { %v1166_v33 = vadd.f32 %v1165_v25, %v2307_v35 }
 0x1a1   : > { %v1310_v55 = vmul.f32 0.25, %v1278_v27 }
 0x1a2   : > { %v1214_v60 = vpop.f32.mrf.mxu3  ;;  %v1247_v41 = vmax.f32 %v1166_v33, 0.0 }
 0x1a3   : > { %v1327_v62 = vpack.c.bf16 %v1310_v55, %v1309_v31  ;;  %v1215_v12 = vadd.f32 %v1214_v60, %v2307_v35 }
 0x1a4   : > { %v1279_v46 = vadd.f32 %v1247_v41, %v1036_v45 }
 0x1a5   : > { %1343 = vst [vmem:[%s2336_s27 + $0x70] sm:$0xff] %v1327_v62  ;;  %v1248_v32 = vmax.f32 %v1215_v12, 0.0 }
 0x1a6   : > { %v1311_v3 = vmul.f32 0.25, %v1279_v46 }
 0x1a7   : > { %v1280_v42 = vadd.f32 %v1248_v32, %v1037_v22 }
 0x1a9   : > { %v1312_v35 = vmul.f32 0.25, %v1280_v42 }
 0x1ab   : > { %v1328_v6 = vpack.c.bf16 %v1312_v35, %v1311_v3 }
 0x1ad   : > { %1344 = vst [vmem:[%s2336_s27 + $0x78] sm:$0xff] %v1328_v6 }
 0x1ae   : > { %1817 = shalt.err (!%p1814_p5)
}
 0x1af   : > { %s1871_s21 = smov 128   ;;  %s1872_s23 = smov 8  }
 0x1b0   : > { %1729 = dma.vmem_to_hbm [thread:$0]  (%p1933_p4), %s1361_s15, 2048, %s1363_s5, %s1346_s6, %s1871_s21, %s1871_s21, %s1872_s23  }
 0x1b1 PF: > { %p1735_p6 = scmp.ge.s32.totalorder %s1868_s17, 2  ;;  %s1377_s26 = sand.u32 1, %s1848_s12  }
 0x1b2   : > { %s1378_s27 = scalar_lea.sflag [#allocation3], %s1377_s26 }
 0x1b3   : > { %p1732_p7 = pnand %p1735_p6, %p1940_p8 }
 0x1b5   : > { %p1733_p9 = pneg %p1732_p7 }
 0x1b7   : > { %1843 = dma.done.wait (%p1733_p9), %s1378_s27, 2048  }
 0x1b8   : > { %1845 = vsyncadd (%p1733_p9), %s1378_s27, 4294965248  ;;  %s16_s17 = sadd.s32 1, %s1868_s17   ;;  %s2489_s12 = smov %s1852_s13 }
 0x1b9   : > { %p13_p10 = scmp.ge.s32.totalorder %s16_s17, 4   ;;  %s2490_s13 = smov %s1856_s14 }
 0x1ba   : > { %s2491_s14 = smov %s1946_s25  ;;  %s2492_s15 = smov %s1864_s16 }
 0x1bb   : > { %s2493_s16 = smov %s2495_s20  ;;  %15 = sbr.rel (!%p13_p10) target bundleno = 4 (0x4), region = 70 }
 0x1c0   :  { %1384 = vsyncpa [#allocation3], 1 }
 0x1c1   :  { %1386 = vsyncpa [#allocation3 + $0x1], 1 }

</bundles_post_ra>
